<compile_context>
chip_gen: v5e
topology: v5e:2x2
jax: 0.10.0
libtpu: 0.0.40
codegen_flags: <defaults>
</compile_context>

<pallas_src>
import functools

import jax
import jax.numpy as jnp
from jax import lax
from jax.experimental import pallas as pl
from jax.experimental.pallas import tpu as pltpu


_ROW_TILE = 512          # row block for the streaming row-wise kernels
_BF16 = jnp.bfloat16     # MXU operand dtype (f32 accumulation everywhere)


def _vmem_limit_bytes():
    # Generation-aware scoped-VMEM limit (v5e/v6e: 128 MiB physical, v7x: 64 MiB).
    try:
        info = pltpu.get_tpu_info()
        cap = int(getattr(info, "vmem_capacity_bytes", 128 * 1024 * 1024))
    except Exception:
        cap = 128 * 1024 * 1024
    return int(min(cap // 2, 64 * 1024 * 1024))


_VMEM_LIMIT = _vmem_limit_bytes()


def _cparams(*sems):
    return pltpu.CompilerParams(dimension_semantics=sems,
                                vmem_limit_bytes=_VMEM_LIMIT)


# ----------------------------------------------------------------------------
# In-kernel helpers
# ----------------------------------------------------------------------------

def _ln_f32(x, g, b, eps=1e-5):
    mu = jnp.mean(x, axis=-1, keepdims=True)
    var = jnp.mean(jnp.square(x - mu), axis=-1, keepdims=True)
    return (x - mu) * lax.rsqrt(var + eps) * g + b


# ----------------------------------------------------------------------------
# Row-wise fused kernels (gridded over the flattened row axis)
# ----------------------------------------------------------------------------

def _linear_kernel(x_ref, w_ref, b_ref, o_ref):
    h = jnp.dot(x_ref[...].astype(_BF16), w_ref[...].astype(_BF16),
                preferred_element_type=jnp.float32)
    o_ref[...] = (h + b_ref[...].astype(jnp.float32)).astype(o_ref.dtype)


def _ln_linear_split_kernel(x_ref, g_ref, b_ref, w_ref, bias_ref, *o_refs):
    """LayerNorm -> one wide bf16 matmul -> split columns across the output refs."""
    x = x_ref[...].astype(jnp.float32)
    y = _ln_f32(x, g_ref[...].astype(jnp.float32), b_ref[...].astype(jnp.float32))
    h = jnp.dot(y.astype(_BF16), w_ref[...].astype(_BF16),
                preferred_element_type=jnp.float32)
    h = h + bias_ref[...].astype(jnp.float32)
    off = 0
    for o in o_refs:
        c = o.shape[-1]
        o[...] = h[:, off:off + c].astype(o.dtype)
        off += c


def _ln_linear_glu_kernel(x_ref, g_ref, b_ref, w_ref, left_ref, right_ref, gate_ref,
                          *, hidden):
    """TriangleMultiplication input block: LN -> [w_lr | w_gate] matmul -> GLU."""
    x = x_ref[...].astype(jnp.float32)
    y = _ln_f32(x, g_ref[...].astype(jnp.float32), b_ref[...].astype(jnp.float32))
    h = jnp.dot(y.astype(_BF16), w_ref[...].astype(_BF16),
                preferred_element_type=jnp.float32)
    a = h[:, :2 * hidden]
    gg = h[:, 2 * hidden:4 * hidden]
    gate = h[:, 4 * hidden:]
    lr = a * jax.nn.sigmoid(gg)
    left_ref[...] = lr[:, :hidden].astype(left_ref.dtype)
    right_ref[...] = lr[:, hidden:].astype(right_ref.dtype)
    gate_ref[...] = gate.astype(gate_ref.dtype)


def _transition_kernel(x_ref, g_ref, b_ref, w1_ref, w2_ref, o_ref, *, inner):
    """Whole SwiGLU transition: LN -> matmul -> swiglu -> matmul, in one kernel."""
    x = x_ref[...].astype(jnp.float32)
    y = _ln_f32(x, g_ref[...].astype(jnp.float32), b_ref[...].astype(jnp.float32))
    h = jnp.dot(y.astype(_BF16), w1_ref[...].astype(_BF16),
                preferred_element_type=jnp.float32)
    a, gg = h[:, :inner], h[:, inner:]
    z = a * gg * jax.nn.sigmoid(gg)
    o_ref[...] = jnp.dot(z.astype(_BF16), w2_ref[...].astype(_BF16),
                         preferred_element_type=jnp.float32).astype(o_ref.dtype)


def _gate_linear_kernel(x_ref, gate_ref, w_ref, b_ref, o_ref):
    """(x * sigmoid(gate)) @ w + b."""
    z = x_ref[...].astype(jnp.float32) * jax.nn.sigmoid(gate_ref[...].astype(jnp.float32))
    h = jnp.dot(z.astype(_BF16), w_ref[...].astype(_BF16),
                preferred_element_type=jnp.float32)
    o_ref[...] = (h + b_ref[...].astype(jnp.float32)).astype(o_ref.dtype)


def _tri_out_kernel(h_ref, gate_ref, g_ref, b_ref, w_ref, o_ref):
    """TriangleMultiplication output block: (LN(h) * sigmoid(gate)) @ w_out."""
    y = _ln_f32(h_ref[...].astype(jnp.float32), g_ref[...].astype(jnp.float32),
                b_ref[...].astype(jnp.float32))
    y = y * jax.nn.sigmoid(gate_ref[...].astype(jnp.float32))
    o_ref[...] = jnp.dot(y.astype(_BF16), w_ref[...].astype(_BF16),
                         preferred_element_type=jnp.float32).astype(o_ref.dtype)


# ----------------------------------------------------------------------------
# Attention kernels
# ----------------------------------------------------------------------------

def _mha_kernel(*refs, scale, heads, dim_head, has_bias, has_mem):
    """Multi-head attention, heads looped in-kernel, lane-dense (G, N, H*Dh) layout.

    refs: q (1,TQ,HD), k (1,Nk,HD), v (1,Nk,HD), [bias (1,H,TQ,Nk)], [mem_kv (2,H,M,Dh)],
          out (1,TQ,HD)."""
    it = iter(refs)
    q_ref = next(it)
    k_ref = next(it)
    v_ref = next(it)
    b_ref = next(it) if has_bias else None
    m_ref = next(it) if has_mem else None
    o_ref = next(it)

    for h in range(heads):
        sl = slice(h * dim_head, (h + 1) * dim_head)
        qh = q_ref[0, :, sl].astype(_BF16)                 # (TQ, Dh)
        kh = k_ref[0, :, sl].astype(_BF16)                 # (Nk, Dh)
        vh = v_ref[0, :, sl].astype(_BF16)                 # (Nk, Dh)
        s = lax.dot_general(qh, kh, (((1,), (1,)), ((), ())),
                            preferred_element_type=jnp.float32) * scale   # (TQ, Nk)
        if has_bias:
            s = s + b_ref[0, h].astype(jnp.float32)
        if has_mem:
            mk = m_ref[0, h].astype(_BF16)                 # (M, Dh)
            mv = m_ref[1, h].astype(_BF16)                 # (M, Dh)
            sm = lax.dot_general(qh, mk, (((1,), (1,)), ((), ())),
                                 preferred_element_type=jnp.float32) * scale  # (TQ, M)
            m_max = jnp.maximum(jnp.max(s, axis=-1, keepdims=True),
                                jnp.max(sm, axis=-1, keepdims=True))
            p = jnp.exp(s - m_max)
            pm = jnp.exp(sm - m_max)
            denom = (jnp.sum(p, axis=-1, keepdims=True)
                     + jnp.sum(pm, axis=-1, keepdims=True))
            acc = (jnp.dot(p.astype(_BF16), vh, preferred_element_type=jnp.float32)
                   + jnp.dot(pm.astype(_BF16), mv, preferred_element_type=jnp.float32))
        else:
            m_max = jnp.max(s, axis=-1, keepdims=True)
            p = jnp.exp(s - m_max)
            denom = jnp.sum(p, axis=-1, keepdims=True)
            acc = jnp.dot(p.astype(_BF16), vh, preferred_element_type=jnp.float32)
        out_h = acc * pl.reciprocal(denom, approx=True)
        o_ref[0, :, sl] = out_h.astype(o_ref.dtype)


def _pwa_attn_kernel(l_ref, v_ref, o_ref, *, heads, dim_head):
    """MSA pair-weighted averaging: softmax(pair logits) applied to MSA values.

    l_ref: (1, H, TI, N) logits; v_ref: (1, S, N, H*Dh); o_ref: (1, S, TI, H*Dh)."""
    S = v_ref.shape[1]
    probs = []
    for h in range(heads):
        s = l_ref[0, h].astype(jnp.float32)                 # (TI, N)
        s = s - jnp.max(s, axis=-1, keepdims=True)
        p = jnp.exp(s)
        p = p * pl.reciprocal(jnp.sum(p, axis=-1, keepdims=True), approx=True)
        probs.append(p.astype(_BF16))
    # TODO(synk): the s-loop unrolls; for very large MSA depth switch to lax.fori_loop.
    for si in range(S):
        for h in range(heads):
            sl = slice(h * dim_head, (h + 1) * dim_head)
            vh = v_ref[0, si, :, sl].astype(_BF16)          # (N, Dh)
            oh = jnp.dot(probs[h], vh, preferred_element_type=jnp.float32)
            o_ref[0, si, :, sl] = oh.astype(o_ref.dtype)


def _bmm_kernel(a_ref, b_ref, o_ref):
    o_ref[0] = jnp.dot(a_ref[0].astype(_BF16), b_ref[0].astype(_BF16),
                       preferred_element_type=jnp.float32).astype(o_ref.dtype)


# ----------------------------------------------------------------------------
# pallas_call wrappers
# ----------------------------------------------------------------------------

def _call_rowwise(kernel, row_inputs, residents, out_cols, out_dtype):
    """Grid the flattened row axis; keep small params (weights, LN/bias) VMEM-resident."""
    multi = isinstance(out_cols, (tuple, list))
    cols = tuple(out_cols) if multi else (out_cols,)
    M = row_inputs[0].shape[0]
    TM = M if M <= _ROW_TILE else _ROW_TILE
    res2 = [w.reshape(1, -1) if w.ndim == 1 else w for w in residents]
    out_shape = tuple(jax.ShapeDtypeStruct((M, c), out_dtype) for c in cols)
    out_specs = tuple(pl.BlockSpec((TM, c), lambda i: (i, 0)) for c in cols)
    return pl.pallas_call(
        kernel,
        out_shape=out_shape if multi else out_shape[0],
        grid=(pl.cdiv(M, TM),),
        in_specs=[pl.BlockSpec((TM, r.shape[1]), lambda i: (i, 0)) for r in row_inputs]
                 + [pl.BlockSpec(w.shape, lambda i: (0, 0)) for w in res2],
        out_specs=out_specs if multi else out_specs[0],
        compiler_params=_cparams("parallel"),
    )(*row_inputs, *res2)


def linear(x, w, b=None):
    K, Nout = w.shape
    lead = x.shape[:-1]
    if b is None:
        b = jnp.zeros((Nout,), jnp.float32)
    out = _call_rowwise(_linear_kernel, [x.reshape(-1, K)], [w, b], Nout, x.dtype)
    return out.reshape(*lead, Nout)


def ln_linear(x, ln_g, ln_b, w, b=None):
    K, Nout = w.shape
    lead = x.shape[:-1]
    if b is None:
        b = jnp.zeros((Nout,), jnp.float32)
    out = _call_rowwise(_ln_linear_split_kernel, [x.reshape(-1, K)],
                        [ln_g, ln_b, w, b], Nout, x.dtype)
    return out.reshape(*lead, Nout)


def ln_linear_split(x, ln_g, ln_b, w, b, out_cols):
    K = w.shape[0]
    lead = x.shape[:-1]
    if b is None:
        b = jnp.zeros((w.shape[1],), jnp.float32)
    outs = _call_rowwise(_ln_linear_split_kernel, [x.reshape(-1, K)],
                         [ln_g, ln_b, w, b], tuple(out_cols), x.dtype)
    return tuple(o.reshape(*lead, c) for o, c in zip(outs, out_cols))


def gate_linear(x, gate, w, b=None):
    K, Nout = w.shape
    lead = x.shape[:-1]
    if b is None:
        b = jnp.zeros((Nout,), jnp.float32)
    out = _call_rowwise(_gate_linear_kernel,
                        [x.reshape(-1, K), gate.reshape(-1, K)], [w, b], Nout, x.dtype)
    return out.reshape(*lead, Nout)


def batched_matmul(a, b):
    """a: (G, M, K) @ b: (G, K, N) -> (G, M, N); parallel over G, M and N tiled."""
    G, M, K = a.shape
    N = b.shape[-1]
    TM = min(M, 256)
    TN = min(N, 512)
    # TODO(synk): add a K grid axis with an f32 VMEM accumulator for very large K (tri-mult
    # at large N) and pad the tiny-S OPM contraction so the MXU contraction dim is >= 128.
    return pl.pallas_call(
        _bmm_kernel,
        out_shape=jax.ShapeDtypeStruct((G, M, N), a.dtype),
        grid=(G, pl.cdiv(M, TM), pl.cdiv(N, TN)),
        in_specs=[pl.BlockSpec((1, TM, K), lambda g, m, n: (g, m, 0)),
                  pl.BlockSpec((1, K, TN), lambda g, m, n: (g, 0, n))],
        out_specs=pl.BlockSpec((1, TM, TN), lambda g, m, n: (g, m, n)),
        compiler_params=_cparams("parallel", "parallel", "parallel"),
    )(a, b)


def mha(q, k, v, bias, mem_kv, *, heads, dim_head, scale, rep=1):
    """softmax(q k^T * scale + bias) v with heads in-kernel.

    q/k/v: (G, Nq/Nk, H*Dh) with G = Bb*rep.  bias: (Bb, H, Nq, Nk) or None -- it is
    shared across the `rep` row replicas: the replica axis is the innermost grid axis and
    the bias index_map ignores it, so Pallas does not re-DMA the bias block.
    mem_kv: (2, H, M, Dh) VMEM-resident memory key/values or None."""
    G, Nq, inner = q.shape
    Nk = k.shape[1]
    Bb = G // rep
    TQ = min(Nq, 256)
    has_bias = bias is not None
    has_mem = mem_kv is not None

    in_specs = [pl.BlockSpec((1, TQ, inner), lambda b, qi, r: (b * rep + r, qi, 0)),
                pl.BlockSpec((1, Nk, inner), lambda b, qi, r: (b * rep + r, 0, 0)),
                pl.BlockSpec((1, Nk, inner), lambda b, qi, r: (b * rep + r, 0, 0))]
    args = [q, k, v]
    if has_bias:
        in_specs.append(pl.BlockSpec((1, heads, TQ, Nk), lambda b, qi, r: (b, 0, qi, 0)))
        args.append(bias)
    if has_mem:
        in_specs.append(pl.BlockSpec(mem_kv.shape, lambda b, qi, r: (0, 0, 0, 0)))
        args.append(mem_kv)

    kern = functools.partial(_mha_kernel, scale=scale, heads=heads, dim_head=dim_head,
                             has_bias=has_bias, has_mem=has_mem)
    # TODO(synk): for very long sequences add a K-axis grid with online-softmax carry.
    return pl.pallas_call(
        kern,
        out_shape=jax.ShapeDtypeStruct((G, Nq, inner), q.dtype),
        grid=(Bb, pl.cdiv(Nq, TQ), rep),
        in_specs=in_specs,
        out_specs=pl.BlockSpec((1, TQ, inner), lambda b, qi, r: (b * rep + r, qi, 0)),
        compiler_params=_cparams("parallel", "arbitrary", "arbitrary"),
    )(*args)


# ----------------------------------------------------------------------------
# Parameter construction (deterministic)
# ----------------------------------------------------------------------------

class ParamGen:
    def __init__(self, key):
        self.key = key

    def take(self, *shape, scale=0.02, dtype=_BF16):
        self.key, sub = jax.random.split(self.key)
        return (scale * jax.random.normal(sub, shape, jnp.float32)).astype(dtype)


def _ln(dim):
    return jnp.ones((dim,), jnp.float32), jnp.zeros((dim,), jnp.float32)


def make_attention_params(pg, dim, heads, dim_head, num_mem):
    inner = heads * dim_head
    g, b = _ln(dim)
    w_q = pg.take(dim, inner)
    b_q = pg.take(inner, dtype=jnp.float32)
    w_kv = pg.take(dim, 2 * inner)
    w_g = pg.take(dim, inner)
    b_g = jnp.full((inner,), -2.0, jnp.float32)
    p = dict(ln_g=g, ln_b=b,
             # fused [q | kv | gate] projection -> one wide bf16 MXU matmul
             w_qkvg=jnp.concatenate([w_q, w_kv, w_g], axis=1),
             b_qkvg=jnp.concatenate([b_q, jnp.zeros((2 * inner,), jnp.float32), b_g]),
             w_o=pg.take(inner, dim))
    if num_mem > 0:
        p['mem_kv'] = pg.take(2, heads, num_mem, dim_head)
    return p


def make_transition_params(pg, dim, expansion=4):
    inner = dim * expansion
    g, b = _ln(dim)
    return dict(ln_g=g, ln_b=b, w1=pg.take(dim, 2 * inner), w2=pg.take(inner, dim))


def make_opm_params(pg, dim_msa, dim_pairwise, hidden):
    g, b = _ln(dim_msa)
    return dict(ln_g=g, ln_b=b, w_h=pg.take(dim_msa, 2 * hidden),
                w_o=pg.take(hidden * hidden, dim_pairwise),
                b_o=pg.take(dim_pairwise, dtype=jnp.float32))


def make_pwa_params(pg, dim_msa, dim_pairwise, heads, dim_head):
    inner = heads * dim_head
    mg, mb = _ln(dim_msa)
    pg_, pb = _ln(dim_pairwise)
    return dict(msa_ln_g=mg, msa_ln_b=mb, w_vg=pg.take(dim_msa, 2 * inner),
                pw_ln_g=pg_, pw_ln_b=pb, w_attn=pg.take(dim_pairwise, heads),
                w_out=pg.take(inner, dim_msa))


def make_tri_mult_params(pg, dim, hidden):
    g, b = _ln(dim)
    og, ob = _ln(hidden)
    w_lr = pg.take(dim, 4 * hidden)
    w_gate = pg.take(dim, hidden)
    return dict(pre_g=g, pre_b=b,
                # fused [left/right (GLU) | out-gate] projection
                w_lrg=jnp.concatenate([w_lr, w_gate], axis=1),
                out_g=og, out_b=ob, w_out=pg.take(hidden, dim))


def make_tri_attn_params(pg, dim, heads, dim_head):
    return dict(w_bias=pg.take(dim, heads),
                attn=make_attention_params(pg, dim, heads, dim_head, 0))


def make_pairwise_block_params(pg, dim_pairwise, tri_heads, tri_dim_head):
    return dict(tri_out=make_tri_mult_params(pg, dim_pairwise, dim_pairwise),
                tri_in=make_tri_mult_params(pg, dim_pairwise, dim_pairwise),
                attn_start=make_tri_attn_params(pg, dim_pairwise, tri_heads, tri_dim_head),
                attn_end=make_tri_attn_params(pg, dim_pairwise, tri_heads, tri_dim_head),
                trans=make_transition_params(pg, dim_pairwise))


def make_msa_module_params(pg, cfg):
    layers = []
    for _ in range(cfg['msa_depth']):
        layers.append(dict(
            opm=make_opm_params(pg, cfg['dim_msa'], cfg['dim_pairwise'], cfg['opm_hidden']),
            pwa=make_pwa_params(pg, cfg['dim_msa'], cfg['dim_pairwise'],
                                cfg['pwa_heads'], cfg['pwa_dim_head']),
            msa_trans=make_transition_params(pg, cfg['dim_msa']),
            pair=make_pairwise_block_params(pg, cfg['dim_pairwise'],
                                            cfg['tri_heads'], cfg['tri_dim_head'])))
    return dict(w_s2m=pg.take(cfg['dim_single'], cfg['dim_msa']), layers=layers)


def make_attn_pair_bias_params(pg, cfg):
    g, b = _ln(cfg['dim_pairwise'])
    return dict(bias_ln_g=g, bias_ln_b=b,
                # NOTE: reference zero-inits this linear; random here so the path runs.
                w_bias=pg.take(cfg['dim_pairwise'], cfg['attn_heads']),
                attn=make_attention_params(pg, cfg['dim_single'], cfg['attn_heads'],
                                           cfg['attn_dim_head'], cfg['num_memory_kv']))


def make_chai_one_params(key, cfg):
    pg = ParamGen(key)
    return dict(msa_module=make_msa_module_params(pg, cfg),
                attn_layers=[make_attn_pair_bias_params(pg, cfg)
                             for _ in range(cfg['attn_layers'])])


# ----------------------------------------------------------------------------
# Forward passes (thin JAX glue around the fused Pallas kernels)
# ----------------------------------------------------------------------------

def attention_forward(p, x, attn_bias, *, heads, dim_head, num_mem, bias_rep=1):
    """Gated multi-head attention with optional per-head additive bias and memory kv.

    x: (G, N, dim).  attn_bias: (G // bias_rep, H, N, N) or None (bias-free variant)."""
    inner = heads * dim_head
    # fused LN + [q|k|v|gate] projection, split inside the kernel (no HBM split copies)
    q, k, v, gates = ln_linear_split(x, p['ln_g'], p['ln_b'], p['w_qkvg'], p['b_qkvg'],
                                     (inner, inner, inner, inner))
    mem_kv = p.get('mem_kv') if num_mem > 0 else None
    out = mha(q, k, v, attn_bias, mem_kv, heads=heads, dim_head=dim_head,
              scale=float(dim_head) ** -0.5, rep=bias_rep)
    # fused sigmoid-gate + output projection
    return gate_linear(out, gates, p['w_o'])


def transition_forward(p, x):
    D = x.shape[-1]
    inner = p['w2'].shape[0]
    lead = x.shape[:-1]
    out = _call_rowwise(functools.partial(_transition_kernel, inner=inner),
                        [x.reshape(-1, D)],
                        [p['ln_g'], p['ln_b'], p['w1'], p['w2']], D, x.dtype)
    return out.reshape(*lead, D)


def opm_forward(p, msa):
    B, S, N, _ = msa.shape
    hid = p['w_h'].shape[1] // 2
    a, b = ln_linear_split(msa, p['ln_g'], p['ln_b'], p['w_h'], None, (hid, hid))
    # TODO(synk): the contraction dim here is S (tiny); restructure for a >=128 MXU K.
    a_t = jnp.transpose(a, (0, 2, 3, 1)).reshape(B, N * hid, S)   # (B, i*d, s)
    b_t = b.reshape(B, S, N * hid)                                # (B, s, j*e)
    op = batched_matmul(a_t, b_t)                                 # (B, i*d, j*e)
    op = op.reshape(B, N, hid, N, hid).transpose(0, 1, 3, 2, 4).reshape(B, N, N, hid * hid)
    # fold the 1/S mean into the (tiny) output weight instead of an extra HBM pass on op
    return linear(op, p['w_o'] * (1.0 / float(S)), p['b_o'])


def pwa_forward(p, msa, pairwise, *, heads, dim_head):
    B, S, N, _ = msa.shape
    H, Dh = heads, dim_head
    inner = H * Dh
    values, gates = ln_linear_split(msa, p['msa_ln_g'], p['msa_ln_b'], p['w_vg'], None,
                                    (inner, inner))               # each (B,S,N,H*Dh)
    # TODO(synk): fuse this head-count-wide projection + transpose into the kernel below.
    logits = ln_linear(pairwise, p['pw_ln_g'], p['pw_ln_b'], p['w_attn'])   # (B,N,N,H)
    logits = jnp.transpose(logits, (0, 3, 1, 2))                            # (B,H,N,N)
    TI = min(N, 256)
    out = pl.pallas_call(
        functools.partial(_pwa_attn_kernel, heads=H, dim_head=Dh),
        out_shape=jax.ShapeDtypeStruct((B, S, N, inner), msa.dtype),
        grid=(B, pl.cdiv(N, TI)),
        in_specs=[pl.BlockSpec((1, H, TI, N), lambda b, i: (b, 0, i, 0)),
                  pl.BlockSpec((1, S, N, inner), lambda b, i: (b, 0, 0, 0))],
        out_specs=pl.BlockSpec((1, S, TI, inner), lambda b, i: (b, 0, i, 0)),
        compiler_params=_cparams("parallel", "arbitrary"),
    )(logits, values)
    return gate_linear(out, gates, p['w_out'])                    # fused gate + projection


def tri_mult_forward(p, pairwise, *, mix):
    B, N, _, D = pairwise.shape
    Hh = p['w_out'].shape[0]          # hidden (== dim in this config, as in the reference)
    x2 = pairwise.reshape(-1, D)
    left, right, gate = _call_rowwise(
        functools.partial(_ln_linear_glu_kernel, hidden=Hh),
        [x2], [p['pre_g'], p['pre_b'], p['w_lrg']], (Hh, Hh, Hh), pairwise.dtype)
    left = left.reshape(B, N, N, Hh)
    right = right.reshape(B, N, N, Hh)
    # TODO(synk): these channel-major transposes are full HBM passes; fold into BlockSpecs.
    l2 = jnp.transpose(left, (0, 3, 1, 2)).reshape(B * Hh, N, N)
    r2 = jnp.transpose(right, (0, 3, 2, 1)).reshape(B * Hh, N, N)
    if mix == 'outgoing':   # out[i,j,d] = sum_k left[i,k,d] * right[j,k,d]
        out = batched_matmul(l2, r2)
    else:                   # incoming: out[i,j,d] = sum_k left[k,j,d] * right[k,i,d]
        out = batched_matmul(r2, l2)
    out = out.reshape(B, Hh, N, N).transpose(0, 2, 3, 1)          # (B,N,N,Hh)
    res = _call_rowwise(_tri_out_kernel,
                        [out.reshape(-1, Hh), gate.reshape(-1, Hh)],
                        [p['out_g'], p['out_b'], p['w_out']], D, pairwise.dtype)
    return res.reshape(B, N, N, D)


def tri_attn_forward(p, pairwise, *, node_type, heads, dim_head):
    B, N, _, D = pairwise.shape
    x = pairwise
    if node_type == 'ending':
        x = jnp.transpose(x, (0, 2, 1, 3))
    # TODO(synk): per-head bias projection has a heads-wide (lane-sparse) output + transpose.
    bias = jnp.transpose(linear(x, p['w_bias']), (0, 3, 1, 2))     # (B,H,N,N)
    x_rows = x.reshape(B * N, N, D)
    # bias is shared across the N query-row replicas: replica axis is the innermost grid
    # axis in mha(), so the bias block is NOT re-fetched per row.
    out = attention_forward(p['attn'], x_rows, bias,
                            heads=heads, dim_head=dim_head, num_mem=0, bias_rep=N)
    out = out.reshape(B, N, N, D)
    if node_type == 'ending':
        out = jnp.transpose(out, (0, 2, 1, 3))
    return out


def pairwise_block_forward(p, pairwise, *, tri_heads, tri_dim_head):
    pairwise = tri_mult_forward(p['tri_out'], pairwise, mix='outgoing') + pairwise
    pairwise = tri_mult_forward(p['tri_in'], pairwise, mix='incoming') + pairwise
    pairwise = tri_attn_forward(p['attn_start'], pairwise, node_type='starting',
                                heads=tri_heads, dim_head=tri_dim_head) + pairwise
    pairwise = tri_attn_forward(p['attn_end'], pairwise, node_type='ending',
                                heads=tri_heads, dim_head=tri_dim_head) + pairwise
    pairwise = transition_forward(p['trans'], pairwise) + pairwise
    return pairwise


def msa_module_forward(p, single, pairwise, msa, *, cfg):
    single_msa = linear(single, p['w_s2m'])                        # (B,N,Dm)
    msa = msa + single_msa[:, None, :, :]                          # msa_init_proj = Identity
    for lp in p['layers']:
        pairwise = opm_forward(lp['opm'], msa) + pairwise
        msa = pwa_forward(lp['pwa'], msa, pairwise,
                          heads=cfg['pwa_heads'], dim_head=cfg['pwa_dim_head']) + msa
        msa = transition_forward(lp['msa_trans'], msa) + msa
        pairwise = pairwise_block_forward(lp['pair'], pairwise,
                                          tri_heads=cfg['tri_heads'],
                                          tri_dim_head=cfg['tri_dim_head'])
    return pairwise                                                # layerscale_output=False


def chai_one_forward(params, single_repr, pairwise_repr, msa, attn_bias=None, *, cfg):
    msa_feats = msa_module_forward(params['msa_module'], single_repr, pairwise_repr, msa,
                                   cfg=cfg)
    H = cfg['attn_heads']
    for i, lp in enumerate(params['attn_layers']):
        if i == 0:
            bias = ln_linear(msa_feats, lp['bias_ln_g'], lp['bias_ln_b'], lp['w_bias'])
            bias = jnp.transpose(bias, (0, 3, 1, 2))               # (B,H,N,N)
        else:
            # TODO(synk): the reference recomputes the pair bias from the previous layer's
            # rank-3 output, which is shape-inconsistent with LayerNorm(dim_pairwise) and
            # would raise in PyTorch; layers >= 2 use no internal pair bias here (and the
            # bias-free attention kernel variant, so no zero tensor is materialized).
            bias = None
        if attn_bias is not None:
            bias = attn_bias if bias is None else bias + attn_bias
        msa_feats = attention_forward(lp['attn'], single_repr, bias,
                                      heads=H, dim_head=cfg['attn_dim_head'],
                                      num_mem=cfg['num_memory_kv'], bias_rep=1)
    return msa_feats


# ----------------------------------------------------------------------------
# Demo
# ----------------------------------------------------------------------------

if __name__ == "__main__":
    # Small, internally consistent hyper-parameters (scaled-down from the module defaults).
    cfg = dict(dim_single=64, dim_pairwise=32, dim_msa=16, msa_depth=2,
               opm_hidden=8, pwa_heads=4, pwa_dim_head=8,
               tri_heads=4, tri_dim_head=8,
               attn_heads=4, attn_dim_head=16, num_memory_kv=8, attn_layers=3)
    B, N, S = 2, 8, 4

    key = jax.random.PRNGKey(0)
    kp, k1, k2, k3 = jax.random.split(key, 4)
    params = make_chai_one_params(kp, cfg)

    single = jax.random.normal(k1, (B, N, cfg['dim_single']), jnp.float32)
    pairwise = jax.random.normal(k2, (B, N, N, cfg['dim_pairwise']), jnp.float32)
    msa = jax.random.normal(k3, (B, S, N, cfg['dim_msa']), jnp.float32)

    fwd = jax.jit(functools.partial(chai_one_forward, cfg=cfg))
    out = fwd(params, single, pairwise, msa)
    out = jax.block_until_ready(out)

    assert out.shape == (B, N, cfg['dim_single']), out.shape
    assert bool(jnp.all(jnp.isfinite(out)))
    print("KERNEL_OK")
</pallas_src>

<mosaic_0001>
module attributes {stable_mosaic.version = 11 : i64} {
  func.func @_ln_linear_split_kernel(%arg0: i32, %arg1: memref<16x64xf32, #tpu.memory_space<vmem>>, %arg2: memref<1x64xf32, #tpu.memory_space<vmem>>, %arg3: memref<1x64xf32, #tpu.memory_space<vmem>>, %arg4: memref<64x256xbf16, #tpu.memory_space<vmem>>, %arg5: memref<1x256xf32, #tpu.memory_space<vmem>>, %arg6: memref<16x64xf32, #tpu.memory_space<vmem>>, %arg7: memref<16x64xf32, #tpu.memory_space<vmem>>, %arg8: memref<16x64xf32, #tpu.memory_space<vmem>>, %arg9: memref<16x64xf32, #tpu.memory_space<vmem>>) attributes {dimension_semantics = [#tpu.dimension_semantics<parallel>], iteration_bounds = array<i64: 1>, scalar_prefetch = 0 : i64, scratch_operands = 0 : i64, tpu.core_type = #tpu.core_type<tc>, window_params = [{transform_indices = @transform_0, window_bounds = array<i64: 16, 64>}, {pipeline_mode = #tpu.pipeline_mode<synchronous>, transform_indices = @transform_1, window_bounds = array<i64: 1, 64>}, {pipeline_mode = #tpu.pipeline_mode<synchronous>, transform_indices = @transform_2, window_bounds = array<i64: 1, 64>}, {pipeline_mode = #tpu.pipeline_mode<synchronous>, transform_indices = @transform_3, window_bounds = array<i64: 64, 256>}, {pipeline_mode = #tpu.pipeline_mode<synchronous>, transform_indices = @transform_4, window_bounds = array<i64: 1, 256>}, {transform_indices = @transform_5, window_bounds = array<i64: 16, 64>}, {transform_indices = @transform_6, window_bounds = array<i64: 16, 64>}, {transform_indices = @transform_7, window_bounds = array<i64: 16, 64>}, {transform_indices = @transform_8, window_bounds = array<i64: 16, 64>}]} {
    %c0 = arith.constant 0 : index
    %c0_0 = arith.constant 0 : index
    %0 = vector.load %arg1[%c0, %c0_0] : memref<16x64xf32, #tpu.memory_space<vmem>>, vector<16x64xf32>
    %c0_1 = arith.constant 0 : index
    %c0_2 = arith.constant 0 : index
    %1 = vector.load %arg2[%c0_1, %c0_2] : memref<1x64xf32, #tpu.memory_space<vmem>>, vector<1x64xf32>
    %c0_3 = arith.constant 0 : index
    %c0_4 = arith.constant 0 : index
    %2 = vector.load %arg3[%c0_3, %c0_4] : memref<1x64xf32, #tpu.memory_space<vmem>>, vector<1x64xf32>
    %cst = arith.constant dense<0.000000e+00> : vector<16xf32>
    %3 = vector.multi_reduction <add>, %0, %cst [1] : vector<16x64xf32> to vector<16xf32>
    %4 = vector.shape_cast %3 : vector<16xf32> to vector<16x1xf32>
    %cst_5 = arith.constant 6.400000e+01 : f32
    %5 = vector.broadcast %cst_5 : f32 to vector<16x1xf32>
    %6 = arith.divf %4, %5 : vector<16x1xf32>
    %7 = vector.broadcast %6 : vector<16x1xf32> to vector<16x64xf32>
    %8 = arith.subf %0, %7 : vector<16x64xf32>
    %9 = arith.mulf %8, %8 : vector<16x64xf32>
    %cst_6 = arith.constant dense<0.000000e+00> : vector<16xf32>
    %10 = vector.multi_reduction <add>, %9, %cst_6 [1] : vector<16x64xf32> to vector<16xf32>
    %11 = vector.shape_cast %10 : vector<16xf32> to vector<16x1xf32>
    %cst_7 = arith.constant 6.400000e+01 : f32
    %12 = vector.broadcast %cst_7 : f32 to vector<16x1xf32>
    %13 = arith.divf %11, %12 : vector<16x1xf32>
    %14 = vector.broadcast %6 : vector<16x1xf32> to vector<16x64xf32>
    %15 = arith.subf %0, %14 : vector<16x64xf32>
    %cst_8 = arith.constant 9.99999974E-6 : f32
    %16 = vector.broadcast %cst_8 : f32 to vector<16x1xf32>
    %17 = arith.addf %13, %16 : vector<16x1xf32>
    %18 = math.rsqrt %17 : vector<16x1xf32>
    %19 = vector.broadcast %18 : vector<16x1xf32> to vector<16x64xf32>
    %20 = arith.mulf %15, %19 : vector<16x64xf32>
    %21 = vector.broadcast %1 : vector<1x64xf32> to vector<16x64xf32>
    %22 = arith.mulf %20, %21 : vector<16x64xf32>
    %23 = vector.broadcast %2 : vector<1x64xf32> to vector<16x64xf32>
    %24 = arith.addf %22, %23 : vector<16x64xf32>
    %25 = arith.truncf %24 : vector<16x64xf32> to vector<16x64xbf16>
    %c0_9 = arith.constant 0 : index
    %c0_10 = arith.constant 0 : index
    %26 = vector.load %arg4[%c0_9, %c0_10] : memref<64x256xbf16, #tpu.memory_space<vmem>>, vector<64x256xbf16>
    %cst_11 = arith.constant dense<0.000000e+00> : vector<16x256xf32>
    %27 = tpu.matmul %25, %26, %cst_11 {dimension_numbers = #tpu.dot_dimension_numbers<[1], [0], [0], [1], [0, 0, 1, 1], [], []>} : vector<16x64xbf16>, vector<64x256xbf16>, vector<16x256xf32> -> vector<16x256xf32>
    %c0_12 = arith.constant 0 : index
    %c0_13 = arith.constant 0 : index
    %28 = vector.load %arg5[%c0_12, %c0_13] : memref<1x256xf32, #tpu.memory_space<vmem>>, vector<1x256xf32>
    %29 = vector.broadcast %28 : vector<1x256xf32> to vector<16x256xf32>
    %30 = arith.addf %27, %29 : vector<16x256xf32>
    %31 = vector.extract_strided_slice %30 {offsets = [0, 0], sizes = [16, 64], strides = [1, 1]} : vector<16x256xf32> to vector<16x64xf32>
    %c0_14 = arith.constant 0 : index
    %c0_15 = arith.constant 0 : index
    %32 = vector.load %arg6[%c0_14, %c0_15] : memref<16x64xf32, #tpu.memory_space<vmem>>, vector<16x64xf32>
    tpu.vector_store %arg6[%c0_14, %c0_15], %31 {strides = array<i32>} : memref<16x64xf32, #tpu.memory_space<vmem>>, vector<16x64xf32>,
    %33 = vector.extract_strided_slice %30 {offsets = [0, 64], sizes = [16, 64], strides = [1, 1]} : vector<16x256xf32> to vector<16x64xf32>
    %c0_16 = arith.constant 0 : index
    %c0_17 = arith.constant 0 : index
    %34 = vector.load %arg7[%c0_16, %c0_17] : memref<16x64xf32, #tpu.memory_space<vmem>>, vector<16x64xf32>
    tpu.vector_store %arg7[%c0_16, %c0_17], %33 {strides = array<i32>} : memref<16x64xf32, #tpu.memory_space<vmem>>, vector<16x64xf32>,
    %35 = vector.extract_strided_slice %30 {offsets = [0, 128], sizes = [16, 64], strides = [1, 1]} : vector<16x256xf32> to vector<16x64xf32>
    %c0_18 = arith.constant 0 : index
    %c0_19 = arith.constant 0 : index
    %36 = vector.load %arg8[%c0_18, %c0_19] : memref<16x64xf32, #tpu.memory_space<vmem>>, vector<16x64xf32>
    tpu.vector_store %arg8[%c0_18, %c0_19], %35 {strides = array<i32>} : memref<16x64xf32, #tpu.memory_space<vmem>>, vector<16x64xf32>,
    %37 = vector.extract_strided_slice %30 {offsets = [0, 192], sizes = [16, 64], strides = [1, 1]} : vector<16x256xf32> to vector<16x64xf32>
    %c0_20 = arith.constant 0 : index
    %c0_21 = arith.constant 0 : index
    %38 = vector.load %arg9[%c0_20, %c0_21] : memref<16x64xf32, #tpu.memory_space<vmem>>, vector<16x64xf32>
    tpu.vector_store %arg9[%c0_20, %c0_21], %37 {strides = array<i32>} : memref<16x64xf32, #tpu.memory_space<vmem>>, vector<16x64xf32>,
    return
  }
  func.func @transform_0(%arg0: i32) -> (i32, i32) {
    %c0_i32 = arith.constant 0 : i32
    %c0_i32_0 = arith.constant 0 : i32
    return %arg0, %c0_i32 : i32, i32
  }
  func.func @transform_1(%arg0: i32) -> (i32, i32) {
    %c0_i32 = arith.constant 0 : i32
    %c0_i32_0 = arith.constant 0 : i32
    %c0_i32_1 = arith.constant 0 : i32
    return %c0_i32, %c0_i32_0 : i32, i32
  }
  func.func @transform_2(%arg0: i32) -> (i32, i32) {
    %c0_i32 = arith.constant 0 : i32
    %c0_i32_0 = arith.constant 0 : i32
    %c0_i32_1 = arith.constant 0 : i32
    return %c0_i32, %c0_i32_0 : i32, i32
  }
  func.func @transform_3(%arg0: i32) -> (i32, i32) {
    %c0_i32 = arith.constant 0 : i32
    %c0_i32_0 = arith.constant 0 : i32
    %c0_i32_1 = arith.constant 0 : i32
    return %c0_i32, %c0_i32_0 : i32, i32
  }
  func.func @transform_4(%arg0: i32) -> (i32, i32) {
    %c0_i32 = arith.constant 0 : i32
    %c0_i32_0 = arith.constant 0 : i32
    %c0_i32_1 = arith.constant 0 : i32
    return %c0_i32, %c0_i32_0 : i32, i32
  }
  func.func @transform_5(%arg0: i32) -> (i32, i32) {
    %c0_i32 = arith.constant 0 : i32
    %c0_i32_0 = arith.constant 0 : i32
    return %arg0, %c0_i32 : i32, i32
  }
  func.func @transform_6(%arg0: i32) -> (i32, i32) {
    %c0_i32 = arith.constant 0 : i32
    %c0_i32_0 = arith.constant 0 : i32
    return %arg0, %c0_i32 : i32, i32
  }
  func.func @transform_7(%arg0: i32) -> (i32, i32) {
    %c0_i32 = arith.constant 0 : i32
    %c0_i32_0 = arith.constant 0 : i32
    return %arg0, %c0_i32 : i32, i32
  }
  func.func @transform_8(%arg0: i32) -> (i32, i32) {
    %c0_i32 = arith.constant 0 : i32
    %c0_i32_0 = arith.constant 0 : i32
    return %arg0, %c0_i32 : i32, i32
  }
}

module attributes {stable_mosaic.version = 11 : i64} {
  func.func @_gate_linear_kernel(%arg0: i32, %arg1: memref<16x64xf32, #tpu.memory_space<vmem>>, %arg2: memref<16x64xf32, #tpu.memory_space<vmem>>, %arg3: memref<64x64xbf16, #tpu.memory_space<vmem>>, %arg4: memref<1x64xf32, #tpu.memory_space<vmem>>, %arg5: memref<16x64xf32, #tpu.memory_space<vmem>>) attributes {dimension_semantics = [#tpu.dimension_semantics<parallel>], iteration_bounds = array<i64: 1>, scalar_prefetch = 0 : i64, scratch_operands = 0 : i64, tpu.core_type = #tpu.core_type<tc>, window_params = [{transform_indices = @transform_0, window_bounds = array<i64: 16, 64>}, {transform_indices = @transform_1, window_bounds = array<i64: 16, 64>}, {pipeline_mode = #tpu.pipeline_mode<synchronous>, transform_indices = @transform_2, window_bounds = array<i64: 64, 64>}, {pipeline_mode = #tpu.pipeline_mode<synchronous>, transform_indices = @transform_3, window_bounds = array<i64: 1, 64>}, {transform_indices = @transform_4, window_bounds = array<i64: 16, 64>}]} {
    %c0 = arith.constant 0 : index
    %c0_0 = arith.constant 0 : index
    %0 = vector.load %arg1[%c0, %c0_0] : memref<16x64xf32, #tpu.memory_space<vmem>>, vector<16x64xf32>
    %c0_1 = arith.constant 0 : index
    %c0_2 = arith.constant 0 : index
    %1 = vector.load %arg2[%c0_1, %c0_2] : memref<16x64xf32, #tpu.memory_space<vmem>>, vector<16x64xf32>
    %2 = arith.negf %1 : vector<16x64xf32>
    %3 = math.exp %2 : vector<16x64xf32>
    %cst = arith.constant 1.000000e+00 : f32
    %4 = vector.broadcast %cst : f32 to vector<16x64xf32>
    %5 = arith.addf %4, %3 : vector<16x64xf32>
    %6 = arith.divf %4, %5 : vector<16x64xf32>
    %7 = arith.mulf %0, %6 : vector<16x64xf32>
    %8 = arith.truncf %7 : vector<16x64xf32> to vector<16x64xbf16>
    %c0_3 = arith.constant 0 : index
    %c0_4 = arith.constant 0 : index
    %9 = vector.load %arg3[%c0_3, %c0_4] : memref<64x64xbf16, #tpu.memory_space<vmem>>, vector<64x64xbf16>
    %cst_5 = arith.constant dense<0.000000e+00> : vector<16x64xf32>
    %10 = tpu.matmul %8, %9, %cst_5 {dimension_numbers = #tpu.dot_dimension_numbers<[1], [0], [0], [1], [0, 0, 1, 1], [], []>} : vector<16x64xbf16>, vector<64x64xbf16>, vector<16x64xf32> -> vector<16x64xf32>
    %c0_6 = arith.constant 0 : index
    %c0_7 = arith.constant 0 : index
    %11 = vector.load %arg4[%c0_6, %c0_7] : memref<1x64xf32, #tpu.memory_space<vmem>>, vector<1x64xf32>
    %12 = vector.broadcast %11 : vector<1x64xf32> to vector<16x64xf32>
    %13 = arith.addf %10, %12 : vector<16x64xf32>
    %c0_8 = arith.constant 0 : index
    %c0_9 = arith.constant 0 : index
    %14 = vector.load %arg5[%c0_8, %c0_9] : memref<16x64xf32, #tpu.memory_space<vmem>>, vector<16x64xf32>
    tpu.vector_store %arg5[%c0_8, %c0_9], %13 {strides = array<i32>} : memref<16x64xf32, #tpu.memory_space<vmem>>, vector<16x64xf32>,
    return
  }
  func.func @transform_0(%arg0: i32) -> (i32, i32) {
    %c0_i32 = arith.constant 0 : i32
    %c0_i32_0 = arith.constant 0 : i32
    return %arg0, %c0_i32 : i32, i32
  }
  func.func @transform_1(%arg0: i32) -> (i32, i32) {
    %c0_i32 = arith.constant 0 : i32
    %c0_i32_0 = arith.constant 0 : i32
    return %arg0, %c0_i32 : i32, i32
  }
  func.func @transform_2(%arg0: i32) -> (i32, i32) {
    %c0_i32 = arith.constant 0 : i32
    %c0_i32_0 = arith.constant 0 : i32
    %c0_i32_1 = arith.constant 0 : i32
    return %c0_i32, %c0_i32_0 : i32, i32
  }
  func.func @transform_3(%arg0: i32) -> (i32, i32) {
    %c0_i32 = arith.constant 0 : i32
    %c0_i32_0 = arith.constant 0 : i32
    %c0_i32_1 = arith.constant 0 : i32
    return %c0_i32, %c0_i32_0 : i32, i32
  }
  func.func @transform_4(%arg0: i32) -> (i32, i32) {
    %c0_i32 = arith.constant 0 : i32
    %c0_i32_0 = arith.constant 0 : i32
    return %arg0, %c0_i32 : i32, i32
  }
}

module attributes {stable_mosaic.version = 11 : i64} {
  func.func @_mha_kernel(%arg0: i32, %arg1: i32, %arg2: i32, %arg3: memref<1x8x64xf32, #tpu.memory_space<vmem>>, %arg4: memref<1x8x64xf32, #tpu.memory_space<vmem>>, %arg5: memref<1x8x64xf32, #tpu.memory_space<vmem>>, %arg6: memref<2x4x8x16xbf16, #tpu.memory_space<vmem>>, %arg7: memref<1x8x64xf32, #tpu.memory_space<vmem>>) attributes {dimension_semantics = [#tpu.dimension_semantics<parallel>, #tpu.dimension_semantics<arbitrary>, #tpu.dimension_semantics<arbitrary>], iteration_bounds = array<i64: 2, 1, 1>, scalar_prefetch = 0 : i64, scratch_operands = 0 : i64, tpu.core_type = #tpu.core_type<tc>, window_params = [{transform_indices = @transform_0, window_bounds = array<i64: 1, 8, 64>}, {transform_indices = @transform_1, window_bounds = array<i64: 1, 8, 64>}, {transform_indices = @transform_2, window_bounds = array<i64: 1, 8, 64>}, {pipeline_mode = #tpu.pipeline_mode<synchronous>, transform_indices = @transform_3, window_bounds = array<i64: 2, 4, 8, 16>}, {transform_indices = @transform_4, window_bounds = array<i64: 1, 8, 64>}]} {
    %c0 = arith.constant 0 : index
    %c0_0 = arith.constant 0 : index
    %c0_1 = arith.constant 0 : index
    %0 = vector.load %arg3[%c0, %c0_0, %c0_1] : memref<1x8x64xf32, #tpu.memory_space<vmem>>, vector<1x8x16xf32>
    %1 = vector.shape_cast %0 : vector<1x8x16xf32> to vector<8x16xf32>
    %2 = arith.truncf %1 : vector<8x16xf32> to vector<8x16xbf16>
    %c0_2 = arith.constant 0 : index
    %c0_3 = arith.constant 0 : index
    %c0_4 = arith.constant 0 : index
    %3 = vector.load %arg4[%c0_2, %c0_3, %c0_4] : memref<1x8x64xf32, #tpu.memory_space<vmem>>, vector<1x8x16xf32>
    %4 = vector.shape_cast %3 : vector<1x8x16xf32> to vector<8x16xf32>
    %5 = arith.truncf %4 : vector<8x16xf32> to vector<8x16xbf16>
    %c0_5 = arith.constant 0 : index
    %c0_6 = arith.constant 0 : index
    %c0_7 = arith.constant 0 : index
    %6 = vector.load %arg5[%c0_5, %c0_6, %c0_7] : memref<1x8x64xf32, #tpu.memory_space<vmem>>, vector<1x8x16xf32>
    %7 = vector.shape_cast %6 : vector<1x8x16xf32> to vector<8x16xf32>
    %8 = arith.truncf %7 : vector<8x16xf32> to vector<8x16xbf16>
    %cst = arith.constant dense<0.000000e+00> : vector<8x8xf32>
    %9 = tpu.matmul %2, %5, %cst {dimension_numbers = #tpu.dot_dimension_numbers<[1], [1], [0], [0], [0, 0, 1, 0], [], []>} : vector<8x16xbf16>, vector<8x16xbf16>, vector<8x8xf32> -> vector<8x8xf32>
    %cst_8 = arith.constant 2.500000e-01 : f32
    %10 = vector.broadcast %cst_8 : f32 to vector<8x8xf32>
    %11 = arith.mulf %9, %10 : vector<8x8xf32>
    %c0_9 = arith.constant 0 : index
    %c0_10 = arith.constant 0 : index
    %c0_11 = arith.constant 0 : index
    %c0_12 = arith.constant 0 : index
    %12 = vector.load %arg6[%c0_9, %c0_10, %c0_11, %c0_12] : memref<2x4x8x16xbf16, #tpu.memory_space<vmem>>, vector<1x1x8x16xbf16>
    %13 = vector.shape_cast %12 : vector<1x1x8x16xbf16> to vector<8x16xbf16>
    %c1 = arith.constant 1 : index
    %c0_13 = arith.constant 0 : index
    %c0_14 = arith.constant 0 : index
    %c0_15 = arith.constant 0 : index
    %14 = vector.load %arg6[%c1, %c0_13, %c0_14, %c0_15] : memref<2x4x8x16xbf16, #tpu.memory_space<vmem>>, vector<1x1x8x16xbf16>
    %15 = vector.shape_cast %14 : vector<1x1x8x16xbf16> to vector<8x16xbf16>
    %cst_16 = arith.constant dense<0.000000e+00> : vector<8x8xf32>
    %16 = tpu.matmul %2, %13, %cst_16 {dimension_numbers = #tpu.dot_dimension_numbers<[1], [1], [0], [0], [0, 0, 1, 0], [], []>} : vector<8x16xbf16>, vector<8x16xbf16>, vector<8x8xf32> -> vector<8x8xf32>
    %cst_17 = arith.constant 2.500000e-01 : f32
    %17 = vector.broadcast %cst_17 : f32 to vector<8x8xf32>
    %18 = arith.mulf %16, %17 : vector<8x8xf32>
    %cst_18 = arith.constant dense<0xFF800000> : vector<8xf32>
    %19 = vector.multi_reduction <maximumf>, %11, %cst_18 [1] : vector<8x8xf32> to vector<8xf32>
    %20 = vector.shape_cast %19 : vector<8xf32> to vector<8x1xf32>
    %cst_19 = arith.constant dense<0xFF800000> : vector<8xf32>
    %21 = vector.multi_reduction <maximumf>, %18, %cst_19 [1] : vector<8x8xf32> to vector<8xf32>
    %22 = vector.shape_cast %21 : vector<8xf32> to vector<8x1xf32>
    %23 = arith.maximumf %20, %22 : vector<8x1xf32>
    %24 = vector.broadcast %23 : vector<8x1xf32> to vector<8x8xf32>
    %25 = arith.subf %11, %24 : vector<8x8xf32>
    %26 = math.exp %25 : vector<8x8xf32>
    %27 = vector.broadcast %23 : vector<8x1xf32> to vector<8x8xf32>
    %28 = arith.subf %18, %27 : vector<8x8xf32>
    %29 = math.exp %28 : vector<8x8xf32>
    %cst_20 = arith.constant dense<0.000000e+00> : vector<8xf32>
    %30 = vector.multi_reduction <add>, %26, %cst_20 [1] : vector<8x8xf32> to vector<8xf32>
    %31 = vector.shape_cast %30 : vector<8xf32> to vector<8x1xf32>
    %cst_21 = arith.constant dense<0.000000e+00> : vector<8xf32>
    %32 = vector.multi_reduction <add>, %29, %cst_21 [1] : vector<8x8xf32> to vector<8xf32>
    %33 = vector.shape_cast %32 : vector<8xf32> to vector<8x1xf32>
    %34 = arith.addf %31, %33 : vector<8x1xf32>
    %35 = arith.truncf %26 : vector<8x8xf32> to vector<8x8xbf16>
    %cst_22 = arith.constant dense<0.000000e+00> : vector<8x16xf32>
    %36 = tpu.matmul %35, %8, %cst_22 {dimension_numbers = #tpu.dot_dimension_numbers<[1], [0], [0], [1], [0, 0, 1, 1], [], []>} : vector<8x8xbf16>, vector<8x16xbf16>, vector<8x16xf32> -> vector<8x16xf32>
    %37 = arith.truncf %29 : vector<8x8xf32> to vector<8x8xbf16>
    %cst_23 = arith.constant dense<0.000000e+00> : vector<8x16xf32>
    %38 = tpu.matmul %37, %15, %cst_23 {dimension_numbers = #tpu.dot_dimension_numbers<[1], [0], [0], [1], [0, 0, 1, 1], [], []>} : vector<8x8xbf16>, vector<8x16xbf16>, vector<8x16xf32> -> vector<8x16xf32>
    %39 = arith.addf %36, %38 : vector<8x16xf32>
    %40 = tpu.reciprocal %34 {approx = true} : vector<8x1xf32> -> vector<8x1xf32>
    %41 = vector.broadcast %40 : vector<8x1xf32> to vector<8x16xf32>
    %42 = arith.mulf %39, %41 : vector<8x16xf32>
    %c0_24 = arith.constant 0 : index
    %c0_25 = arith.constant 0 : index
    %c0_26 = arith.constant 0 : index
    %43 = vector.load %arg7[%c0_24, %c0_25, %c0_26] : memref<1x8x64xf32, #tpu.memory_space<vmem>>, vector<1x8x16xf32>
    %44 = vector.shape_cast %43 : vector<1x8x16xf32> to vector<8x16xf32>
    %45 = vector.shape_cast %42 : vector<8x16xf32> to vector<1x8x16xf32>
    tpu.vector_store %arg7[%c0_24, %c0_25, %c0_26], %45 {strides = array<i32>} : memref<1x8x64xf32, #tpu.memory_space<vmem>>, vector<1x8x16xf32>,
    %c0_27 = arith.constant 0 : index
    %c0_28 = arith.constant 0 : index
    %c16 = arith.constant 16 : index
    %46 = vector.load %arg3[%c0_27, %c0_28, %c16] : memref<1x8x64xf32, #tpu.memory_space<vmem>>, vector<1x8x16xf32>
    %47 = vector.shape_cast %46 : vector<1x8x16xf32> to vector<8x16xf32>
    %48 = arith.truncf %47 : vector<8x16xf32> to vector<8x16xbf16>
    %c0_29 = arith.constant 0 : index
    %c0_30 = arith.constant 0 : index
    %c16_31 = arith.constant 16 : index
    %49 = vector.load %arg4[%c0_29, %c0_30, %c16_31] : memref<1x8x64xf32, #tpu.memory_space<vmem>>, vector<1x8x16xf32>
    %50 = vector.shape_cast %49 : vector<1x8x16xf32> to vector<8x16xf32>
    %51 = arith.truncf %50 : vector<8x16xf32> to vector<8x16xbf16>
    %c0_32 = arith.constant 0 : index
    %c0_33 = arith.constant 0 : index
    %c16_34 = arith.constant 16 : index
    %52 = vector.load %arg5[%c0_32, %c0_33, %c16_34] : memref<1x8x64xf32, #tpu.memory_space<vmem>>, vector<1x8x16xf32>
    %53 = vector.shape_cast %52 : vector<1x8x16xf32> to vector<8x16xf32>
    %54 = arith.truncf %53 : vector<8x16xf32> to vector<8x16xbf16>
    %cst_35 = arith.constant dense<0.000000e+00> : vector<8x8xf32>
    %55 = tpu.matmul %48, %51, %cst_35 {dimension_numbers = #tpu.dot_dimension_numbers<[1], [1], [0], [0], [0, 0, 1, 0], [], []>} : vector<8x16xbf16>, vector<8x16xbf16>, vector<8x8xf32> -> vector<8x8xf32>
    %cst_36 = arith.constant 2.500000e-01 : f32
    %56 = vector.broadcast %cst_36 : f32 to vector<8x8xf32>
    %57 = arith.mulf %55, %56 : vector<8x8xf32>
    %c0_37 = arith.constant 0 : index
    %c1_38 = arith.constant 1 : index
    %c0_39 = arith.constant 0 : index
    %c0_40 = arith.constant 0 : index
    %58 = vector.load %arg6[%c0_37, %c1_38, %c0_39, %c0_40] : memref<2x4x8x16xbf16, #tpu.memory_space<vmem>>, vector<1x1x8x16xbf16>
    %59 = vector.shape_cast %58 : vector<1x1x8x16xbf16> to vector<8x16xbf16>
    %c1_41 = arith.constant 1 : index
    %c1_42 = arith.constant 1 : index
    %c0_43 = arith.constant 0 : index
    %c0_44 = arith.constant 0 : index
    %60 = vector.load %arg6[%c1_41, %c1_42, %c0_43, %c0_44] : memref<2x4x8x16xbf16, #tpu.memory_space<vmem>>, vector<1x1x8x16xbf16>
    %61 = vector.shape_cast %60 : vector<1x1x8x16xbf16> to vector<8x16xbf16>
    %cst_45 = arith.constant dense<0.000000e+00> : vector<8x8xf32>
    %62 = tpu.matmul %48, %59, %cst_45 {dimension_numbers = #tpu.dot_dimension_numbers<[1], [1], [0], [0], [0, 0, 1, 0], [], []>} : vector<8x16xbf16>, vector<8x16xbf16>, vector<8x8xf32> -> vector<8x8xf32>
    %cst_46 = arith.constant 2.500000e-01 : f32
    %63 = vector.broadcast %cst_46 : f32 to vector<8x8xf32>
    %64 = arith.mulf %62, %63 : vector<8x8xf32>
    %cst_47 = arith.constant dense<0xFF800000> : vector<8xf32>
    %65 = vector.multi_reduction <maximumf>, %57, %cst_47 [1] : vector<8x8xf32> to vector<8xf32>
    %66 = vector.shape_cast %65 : vector<8xf32> to vector<8x1xf32>
    %cst_48 = arith.constant dense<0xFF800000> : vector<8xf32>
    %67 = vector.multi_reduction <maximumf>, %64, %cst_48 [1] : vector<8x8xf32> to vector<8xf32>
    %68 = vector.shape_cast %67 : vector<8xf32> to vector<8x1xf32>
    %69 = arith.maximumf %66, %68 : vector<8x1xf32>
    %70 = vector.broadcast %69 : vector<8x1xf32> to vector<8x8xf32>
    %71 = arith.subf %57, %70 : vector<8x8xf32>
    %72 = math.exp %71 : vector<8x8xf32>
    %73 = vector.broadcast %69 : vector<8x1xf32> to vector<8x8xf32>
    %74 = arith.subf %64, %73 : vector<8x8xf32>
    %75 = math.exp %74 : vector<8x8xf32>
    %cst_49 = arith.constant dense<0.000000e+00> : vector<8xf32>
    %76 = vector.multi_reduction <add>, %72, %cst_49 [1] : vector<8x8xf32> to vector<8xf32>
    %77 = vector.shape_cast %76 : vector<8xf32> to vector<8x1xf32>
    %cst_50 = arith.constant dense<0.000000e+00> : vector<8xf32>
    %78 = vector.multi_reduction <add>, %75, %cst_50 [1] : vector<8x8xf32> to vector<8xf32>
    %79 = vector.shape_cast %78 : vector<8xf32> to vector<8x1xf32>
    %80 = arith.addf %77, %79 : vector<8x1xf32>
    %81 = arith.truncf %72 : vector<8x8xf32> to vector<8x8xbf16>
    %cst_51 = arith.constant dense<0.000000e+00> : vector<8x16xf32>
    %82 = tpu.matmul %81, %54, %cst_51 {dimension_numbers = #tpu.dot_dimension_numbers<[1], [0], [0], [1], [0, 0, 1, 1], [], []>} : vector<8x8xbf16>, vector<8x16xbf16>, vector<8x16xf32> -> vector<8x16xf32>
    %83 = arith.truncf %75 : vector<8x8xf32> to vector<8x8xbf16>
    %cst_52 = arith.constant dense<0.000000e+00> : vector<8x16xf32>
    %84 = tpu.matmul %83, %61, %cst_52 {dimension_numbers = #tpu.dot_dimension_numbers<[1], [0], [0], [1], [0, 0, 1, 1], [], []>} : vector<8x8xbf16>, vector<8x16xbf16>, vector<8x16xf32> -> vector<8x16xf32>
    %85 = arith.addf %82, %84 : vector<8x16xf32>
    %86 = tpu.reciprocal %80 {approx = true} : vector<8x1xf32> -> vector<8x1xf32>
    %87 = vector.broadcast %86 : vector<8x1xf32> to vector<8x16xf32>
    %88 = arith.mulf %85, %87 : vector<8x16xf32>
    %c0_53 = arith.constant 0 : index
    %c0_54 = arith.constant 0 : index
    %c16_55 = arith.constant 16 : index
    %89 = vector.load %arg7[%c0_53, %c0_54, %c16_55] : memref<1x8x64xf32, #tpu.memory_space<vmem>>, vector<1x8x16xf32>
    %90 = vector.shape_cast %89 : vector<1x8x16xf32> to vector<8x16xf32>
    %91 = vector.shape_cast %88 : vector<8x16xf32> to vector<1x8x16xf32>
    tpu.vector_store %arg7[%c0_53, %c0_54, %c16_55], %91 {strides = array<i32>} : memref<1x8x64xf32, #tpu.memory_space<vmem>>, vector<1x8x16xf32>,
    %c0_56 = arith.constant 0 : index
    %c0_57 = arith.constant 0 : index
    %c32 = arith.constant 32 : index
    %92 = vector.load %arg3[%c0_56, %c0_57, %c32] : memref<1x8x64xf32, #tpu.memory_space<vmem>>, vector<1x8x16xf32>
    %93 = vector.shape_cast %92 : vector<1x8x16xf32> to vector<8x16xf32>
    %94 = arith.truncf %93 : vector<8x16xf32> to vector<8x16xbf16>
    %c0_58 = arith.constant 0 : index
    %c0_59 = arith.constant 0 : index
    %c32_60 = arith.constant 32 : index
    %95 = vector.load %arg4[%c0_58, %c0_59, %c32_60] : memref<1x8x64xf32, #tpu.memory_space<vmem>>, vector<1x8x16xf32>
    %96 = vector.shape_cast %95 : vector<1x8x16xf32> to vector<8x16xf32>
    %97 = arith.truncf %96 : vector<8x16xf32> to vector<8x16xbf16>
    %c0_61 = arith.constant 0 : index
    %c0_62 = arith.constant 0 : index
    %c32_63 = arith.constant 32 : index
    %98 = vector.load %arg5[%c0_61, %c0_62, %c32_63] : memref<1x8x64xf32, #tpu.memory_space<vmem>>, vector<1x8x16xf32>
    %99 = vector.shape_cast %98 : vector<1x8x16xf32> to vector<8x16xf32>
    %100 = arith.truncf %99 : vector<8x16xf32> to vector<8x16xbf16>
    %cst_64 = arith.constant dense<0.000000e+00> : vector<8x8xf32>
    %101 = tpu.matmul %94, %97, %cst_64 {dimension_numbers = #tpu.dot_dimension_numbers<[1], [1], [0], [0], [0, 0, 1, 0], [], []>} : vector<8x16xbf16>, vector<8x16xbf16>, vector<8x8xf32> -> vector<8x8xf32>
    %cst_65 = arith.constant 2.500000e-01 : f32
    %102 = vector.broadcast %cst_65 : f32 to vector<8x8xf32>
    %103 = arith.mulf %101, %102 : vector<8x8xf32>
    %c0_66 = arith.constant 0 : index
    %c2 = arith.constant 2 : index
    %c0_67 = arith.constant 0 : index
    %c0_68 = arith.constant 0 : index
    %104 = vector.load %arg6[%c0_66, %c2, %c0_67, %c0_68] : memref<2x4x8x16xbf16, #tpu.memory_space<vmem>>, vector<1x1x8x16xbf16>
    %105 = vector.shape_cast %104 : vector<1x1x8x16xbf16> to vector<8x16xbf16>
    %c1_69 = arith.constant 1 : index
    %c2_70 = arith.constant 2 : index
    %c0_71 = arith.constant 0 : index
    %c0_72 = arith.constant 0 : index
    %106 = vector.load %arg6[%c1_69, %c2_70, %c0_71, %c0_72] : memref<2x4x8x16xbf16, #tpu.memory_space<vmem>>, vector<1x1x8x16xbf16>
    %107 = vector.shape_cast %106 : vector<1x1x8x16xbf16> to vector<8x16xbf16>
    %cst_73 = arith.constant dense<0.000000e+00> : vector<8x8xf32>
    %108 = tpu.matmul %94, %105, %cst_73 {dimension_numbers = #tpu.dot_dimension_numbers<[1], [1], [0], [0], [0, 0, 1, 0], [], []>} : vector<8x16xbf16>, vector<8x16xbf16>, vector<8x8xf32> -> vector<8x8xf32>
    %cst_74 = arith.constant 2.500000e-01 : f32
    %109 = vector.broadcast %cst_74 : f32 to vector<8x8xf32>
    %110 = arith.mulf %108, %109 : vector<8x8xf32>
    %cst_75 = arith.constant dense<0xFF800000> : vector<8xf32>
    %111 = vector.multi_reduction <maximumf>, %103, %cst_75 [1] : vector<8x8xf32> to vector<8xf32>
    %112 = vector.shape_cast %111 : vector<8xf32> to vector<8x1xf32>
    %cst_76 = arith.constant dense<0xFF800000> : vector<8xf32>
    %113 = vector.multi_reduction <maximumf>, %110, %cst_76 [1] : vector<8x8xf32> to vector<8xf32>
    %114 = vector.shape_cast %113 : vector<8xf32> to vector<8x1xf32>
    %115 = arith.maximumf %112, %114 : vector<8x1xf32>
    %116 = vector.broadcast %115 : vector<8x1xf32> to vector<8x8xf32>
    %117 = arith.subf %103, %116 : vector<8x8xf32>
    %118 = math.exp %117 : vector<8x8xf32>
    %119 = vector.broadcast %115 : vector<8x1xf32> to vector<8x8xf32>
    %120 = arith.subf %110, %119 : vector<8x8xf32>
    %121 = math.exp %120 : vector<8x8xf32>
    %cst_77 = arith.constant dense<0.000000e+00> : vector<8xf32>
    %122 = vector.multi_reduction <add>, %118, %cst_77 [1] : vector<8x8xf32> to vector<8xf32>
    %123 = vector.shape_cast %122 : vector<8xf32> to vector<8x1xf32>
    %cst_78 = arith.constant dense<0.000000e+00> : vector<8xf32>
    %124 = vector.multi_reduction <add>, %121, %cst_78 [1] : vector<8x8xf32> to vector<8xf32>
    %125 = vector.shape_cast %124 : vector<8xf32> to vector<8x1xf32>
    %126 = arith.addf %123, %125 : vector<8x1xf32>
    %127 = arith.truncf %118 : vector<8x8xf32> to vector<8x8xbf16>
    %cst_79 = arith.constant dense<0.000000e+00> : vector<8x16xf32>
    %128 = tpu.matmul %127, %100, %cst_79 {dimension_numbers = #tpu.dot_dimension_numbers<[1], [0], [0], [1], [0, 0, 1, 1], [], []>} : vector<8x8xbf16>, vector<8x16xbf16>, vector<8x16xf32> -> vector<8x16xf32>
    %129 = arith.truncf %121 : vector<8x8xf32> to vector<8x8xbf16>
    %cst_80 = arith.constant dense<0.000000e+00> : vector<8x16xf32>
    %130 = tpu.matmul %129, %107, %cst_80 {dimension_numbers = #tpu.dot_dimension_numbers<[1], [0], [0], [1], [0, 0, 1, 1], [], []>} : vector<8x8xbf16>, vector<8x16xbf16>, vector<8x16xf32> -> vector<8x16xf32>
    %131 = arith.addf %128, %130 : vector<8x16xf32>
    %132 = tpu.reciprocal %126 {approx = true} : vector<8x1xf32> -> vector<8x1xf32>
    %133 = vector.broadcast %132 : vector<8x1xf32> to vector<8x16xf32>
    %134 = arith.mulf %131, %133 : vector<8x16xf32>
    %c0_81 = arith.constant 0 : index
    %c0_82 = arith.constant 0 : index
    %c32_83 = arith.constant 32 : index
    %135 = vector.load %arg7[%c0_81, %c0_82, %c32_83] : memref<1x8x64xf32, #tpu.memory_space<vmem>>, vector<1x8x16xf32>
    %136 = vector.shape_cast %135 : vector<1x8x16xf32> to vector<8x16xf32>
    %137 = vector.shape_cast %134 : vector<8x16xf32> to vector<1x8x16xf32>
    tpu.vector_store %arg7[%c0_81, %c0_82, %c32_83], %137 {strides = array<i32>} : memref<1x8x64xf32, #tpu.memory_space<vmem>>, vector<1x8x16xf32>,
    %c0_84 = arith.constant 0 : index
    %c0_85 = arith.constant 0 : index
    %c48 = arith.constant 48 : index
    %138 = vector.load %arg3[%c0_84, %c0_85, %c48] : memref<1x8x64xf32, #tpu.memory_space<vmem>>, vector<1x8x16xf32>
    %139 = vector.shape_cast %138 : vector<1x8x16xf32> to vector<8x16xf32>
    %140 = arith.truncf %139 : vector<8x16xf32> to vector<8x16xbf16>
    %c0_86 = arith.constant 0 : index
    %c0_87 = arith.constant 0 : index
    %c48_88 = arith.constant 48 : index
    %141 = vector.load %arg4[%c0_86, %c0_87, %c48_88] : memref<1x8x64xf32, #tpu.memory_space<vmem>>, vector<1x8x16xf32>
    %142 = vector.shape_cast %141 : vector<1x8x16xf32> to vector<8x16xf32>
    %143 = arith.truncf %142 : vector<8x16xf32> to vector<8x16xbf16>
    %c0_89 = arith.constant 0 : index
    %c0_90 = arith.constant 0 : index
    %c48_91 = arith.constant 48 : index
    %144 = vector.load %arg5[%c0_89, %c0_90, %c48_91] : memref<1x8x64xf32, #tpu.memory_space<vmem>>, vector<1x8x16xf32>
    %145 = vector.shape_cast %144 : vector<1x8x16xf32> to vector<8x16xf32>
    %146 = arith.truncf %145 : vector<8x16xf32> to vector<8x16xbf16>
    %cst_92 = arith.constant dense<0.000000e+00> : vector<8x8xf32>
    %147 = tpu.matmul %140, %143, %cst_92 {dimension_numbers = #tpu.dot_dimension_numbers<[1], [1], [0], [0], [0, 0, 1, 0], [], []>} : vector<8x16xbf16>, vector<8x16xbf16>, vector<8x8xf32> -> vector<8x8xf32>
    %cst_93 = arith.constant 2.500000e-01 : f32
    %148 = vector.broadcast %cst_93 : f32 to vector<8x8xf32>
    %149 = arith.mulf %147, %148 : vector<8x8xf32>
    %c0_94 = arith.constant 0 : index
    %c3 = arith.constant 3 : index
    %c0_95 = arith.constant 0 : index
    %c0_96 = arith.constant 0 : index
    %150 = vector.load %arg6[%c0_94, %c3, %c0_95, %c0_96] : memref<2x4x8x16xbf16, #tpu.memory_space<vmem>>, vector<1x1x8x16xbf16>
    %151 = vector.shape_cast %150 : vector<1x1x8x16xbf16> to vector<8x16xbf16>
    %c1_97 = arith.constant 1 : index
    %c3_98 = arith.constant 3 : index
    %c0_99 = arith.constant 0 : index
    %c0_100 = arith.constant 0 : index
    %152 = vector.load %arg6[%c1_97, %c3_98, %c0_99, %c0_100] : memref<2x4x8x16xbf16, #tpu.memory_space<vmem>>, vector<1x1x8x16xbf16>
    %153 = vector.shape_cast %152 : vector<1x1x8x16xbf16> to vector<8x16xbf16>
    %cst_101 = arith.constant dense<0.000000e+00> : vector<8x8xf32>
    %154 = tpu.matmul %140, %151, %cst_101 {dimension_numbers = #tpu.dot_dimension_numbers<[1], [1], [0], [0], [0, 0, 1, 0], [], []>} : vector<8x16xbf16>, vector<8x16xbf16>, vector<8x8xf32> -> vector<8x8xf32>
    %cst_102 = arith.constant 2.500000e-01 : f32
    %155 = vector.broadcast %cst_102 : f32 to vector<8x8xf32>
    %156 = arith.mulf %154, %155 : vector<8x8xf32>
    %cst_103 = arith.constant dense<0xFF800000> : vector<8xf32>
    %157 = vector.multi_reduction <maximumf>, %149, %cst_103 [1] : vector<8x8xf32> to vector<8xf32>
    %158 = vector.shape_cast %157 : vector<8xf32> to vector<8x1xf32>
    %cst_104 = arith.constant dense<0xFF800000> : vector<8xf32>
    %159 = vector.multi_reduction <maximumf>, %156, %cst_104 [1] : vector<8x8xf32> to vector<8xf32>
    %160 = vector.shape_cast %159 : vector<8xf32> to vector<8x1xf32>
    %161 = arith.maximumf %158, %160 : vector<8x1xf32>
    %162 = vector.broadcast %161 : vector<8x1xf32> to vector<8x8xf32>
    %163 = arith.subf %149, %162 : vector<8x8xf32>
    %164 = math.exp %163 : vector<8x8xf32>
    %165 = vector.broadcast %161 : vector<8x1xf32> to vector<8x8xf32>
    %166 = arith.subf %156, %165 : vector<8x8xf32>
    %167 = math.exp %166 : vector<8x8xf32>
    %cst_105 = arith.constant dense<0.000000e+00> : vector<8xf32>
    %168 = vector.multi_reduction <add>, %164, %cst_105 [1] : vector<8x8xf32> to vector<8xf32>
    %169 = vector.shape_cast %168 : vector<8xf32> to vector<8x1xf32>
    %cst_106 = arith.constant dense<0.000000e+00> : vector<8xf32>
    %170 = vector.multi_reduction <add>, %167, %cst_106 [1] : vector<8x8xf32> to vector<8xf32>
    %171 = vector.shape_cast %170 : vector<8xf32> to vector<8x1xf32>
    %172 = arith.addf %169, %171 : vector<8x1xf32>
    %173 = arith.truncf %164 : vector<8x8xf32> to vector<8x8xbf16>
    %cst_107 = arith.constant dense<0.000000e+00> : vector<8x16xf32>
    %174 = tpu.matmul %173, %146, %cst_107 {dimension_numbers = #tpu.dot_dimension_numbers<[1], [0], [0], [1], [0, 0, 1, 1], [], []>} : vector<8x8xbf16>, vector<8x16xbf16>, vector<8x16xf32> -> vector<8x16xf32>
    %175 = arith.truncf %167 : vector<8x8xf32> to vector<8x8xbf16>
    %cst_108 = arith.constant dense<0.000000e+00> : vector<8x16xf32>
    %176 = tpu.matmul %175, %153, %cst_108 {dimension_numbers = #tpu.dot_dimension_numbers<[1], [0], [0], [1], [0, 0, 1, 1], [], []>} : vector<8x8xbf16>, vector<8x16xbf16>, vector<8x16xf32> -> vector<8x16xf32>
    %177 = arith.addf %174, %176 : vector<8x16xf32>
    %178 = tpu.reciprocal %172 {approx = true} : vector<8x1xf32> -> vector<8x1xf32>
    %179 = vector.broadcast %178 : vector<8x1xf32> to vector<8x16xf32>
    %180 = arith.mulf %177, %179 : vector<8x16xf32>
    %c0_109 = arith.constant 0 : index
    %c0_110 = arith.constant 0 : index
    %c48_111 = arith.constant 48 : index
    %181 = vector.load %arg7[%c0_109, %c0_110, %c48_111] : memref<1x8x64xf32, #tpu.memory_space<vmem>>, vector<1x8x16xf32>
    %182 = vector.shape_cast %181 : vector<1x8x16xf32> to vector<8x16xf32>
    %183 = vector.shape_cast %180 : vector<8x16xf32> to vector<1x8x16xf32>
    tpu.vector_store %arg7[%c0_109, %c0_110, %c48_111], %183 {strides = array<i32>} : memref<1x8x64xf32, #tpu.memory_space<vmem>>, vector<1x8x16xf32>,
    return
  }
  func.func @transform_0(%arg0: i32, %arg1: i32, %arg2: i32) -> (i32, i32, i32) {
    %c1_i32 = arith.constant 1 : i32
    %0 = arith.muli %arg0, %c1_i32 : i32
    %1 = arith.addi %0, %arg2 : i32
    %c0_i32 = arith.constant 0 : i32
    %c0_i32_0 = arith.constant 0 : i32
    return %1, %arg1, %c0_i32 : i32, i32, i32
  }
  func.func @transform_1(%arg0: i32, %arg1: i32, %arg2: i32) -> (i32, i32, i32) {
    %c1_i32 = arith.constant 1 : i32
    %0 = arith.muli %arg0, %c1_i32 : i32
    %1 = arith.addi %0, %arg2 : i32
    %c0_i32 = arith.constant 0 : i32
    %c0_i32_0 = arith.constant 0 : i32
    %c0_i32_1 = arith.constant 0 : i32
    return %1, %c0_i32, %c0_i32_0 : i32, i32, i32
  }
  func.func @transform_2(%arg0: i32, %arg1: i32, %arg2: i32) -> (i32, i32, i32) {
    %c1_i32 = arith.constant 1 : i32
    %0 = arith.muli %arg0, %c1_i32 : i32
    %1 = arith.addi %0, %arg2 : i32
    %c0_i32 = arith.constant 0 : i32
    %c0_i32_0 = arith.constant 0 : i32
    %c0_i32_1 = arith.constant 0 : i32
    return %1, %c0_i32, %c0_i32_0 : i32, i32, i32
  }
  func.func @transform_3(%arg0: i32, %arg1: i32, %arg2: i32) -> (i32, i32, i32, i32) {
    %c0_i32 = arith.constant 0 : i32
    %c0_i32_0 = arith.constant 0 : i32
    %c0_i32_1 = arith.constant 0 : i32
    %c0_i32_2 = arith.constant 0 : i32
    %c0_i32_3 = arith.constant 0 : i32
    return %c0_i32, %c0_i32_0, %c0_i32_1, %c0_i32_2 : i32, i32, i32, i32
  }
  func.func @transform_4(%arg0: i32, %arg1: i32, %arg2: i32) -> (i32, i32, i32) {
    %c1_i32 = arith.constant 1 : i32
    %0 = arith.muli %arg0, %c1_i32 : i32
    %1 = arith.addi %0, %arg2 : i32
    %c0_i32 = arith.constant 0 : i32
    %c0_i32_0 = arith.constant 0 : i32
    return %1, %arg1, %c0_i32 : i32, i32, i32
  }
}

</mosaic_0001>

<bundles_post_ra>
// kernel: chai_one_forward.5
= control target key start
LH: loop header
LB: loop body
LE: loop exit
PB: predicated region body
PF: predicated region fallthrough
CT: control target
= control target key end

     0   :  { %9 = vsyncpa [#allocation3], 0  ;;  %s297_s0 = inlined_call_operand.vmem [shape: f32[16,64], index: 0, kind: input, shape index: {}]   ;;  %s298_s1 = inlined_call_operand.vmem [shape: f32[16,64], index: 1, kind: input, shape index: {}]   ;;  %s299_s2 = inlined_call_operand.hbm [shape: bf16[64,64], index: 2, kind: input, shape index: {}]   ;;  %s300_s3 = inlined_call_operand.vmem [shape: f32[1,64], index: 3, kind: input, shape index: {}]   ;;  %s301_s4 = inlined_call_operand.hbm [shape: f32[16,64], index: 4, kind: output, shape index: {}]  }
   0x1   :  { %10 = vsyncpa [#allocation4], 0  ;;  %s19_s17 = sshll.u32 %s299_s2, 4  ;;  %s245_s18 = smov [#allocation2]   ;;  %s20_s17 = int_to_ptr.hbm [resolvable:$true] %s19_s17 }
   0x2   :  { %s21_s19 = sshll.u32 %s245_s18, 4  ;;  %s246_s20 = smov 64   ;;  %s22_s19 = int_to_ptr.vmem [resolvable:$true] %s21_s19 }
   0x3   :  { %s247_s21 = smov 4  }
   0x4   :  { %27 = dma.hbm_to_vmem [thread:$0]  %s20_s17, 512, %s22_s19, [#allocation3], %s246_s20, %s246_s20, %s247_s21  }
   0x5   :  { %241 = dma.done.wait [#allocation3], 512  }
   0x6   :  { %242 = vsyncadd [#allocation3], 4294966784  ;;  %v177_v0 = vld [vmem:[#allocation2 + $0x18] sm:$0xff]  ;;  %v176_v1 = vld [vmem:[#allocation2 + $0x10] sm:$0xff]  ;;  %vm116_vm8 = vcmask 523264   ;;  %s248_s30 = smov [#allocation5]  }
   0x7   :  { %124 = vmatpush.bf16.msra.mxu0 %v177_v0  ;;  %v37_v2 = vld [vmem:[%s298_s1] sm:$0xff]  ;;  %v38_v3 = vld [vmem:[%s298_s1 + $0x8] sm:$0xff]  ;;  %s140_s5 = sshll.u32 %s248_s30, 4  ;;  %s142_s7 = sshll.u32 %s301_s4, 4  ;;  %s141_s5 = int_to_ptr.vmem [resolvable:$true] %s140_s5  ;;  %s143_s7 = int_to_ptr.hbm [resolvable:$true] %s142_s7 }
   0x8   :  { %v155_v4 = vmul.f32 -1.442695, %v37_v2  ;;  %v156_v5 = vmul.f32 -1.442695, %v38_v3  ;;  %v175_v6 = vld [vmem:[#allocation2 + $0x8] sm:$0xff]  ;;  %v174_v7 = vld [vmem:[#allocation2] sm:$0xff] }
   0x9   :  { %v35_v27 = vld [vmem:[%s297_s0] sm:$0xff]  ;;  %v36_v29 = vld [vmem:[%s297_s0 + $0x8] sm:$0xff]  ;;  %s249_s8 = smov 128   ;;  %s250_s9 = smov 8  }
   0xa   :  { %185 = vpow2.f32 %v155_v4  ;;  %v184_v37 = vld [vmem:[%s300_s3] ss:$0 sm:$0xff] }
   0xb   :  { %125 = vmatpush.bf16.msra.mxu0 %v176_v1  ;;  %187 = vpow2.f32 %v156_v5 }
   0xf   :  { %126 = vmatpush.bf16.msra.mxu0 %v175_v6 }
  0x10   :  { %v186_v8 = vpop.eup %185 }
  0x11   :  { %v188_v9 = vpop.eup %187  ;;  %v45_v10 = vadd.f32 1.0, %v186_v8 }
  0x12   :  { %v46_v11 = vadd.f32 1.0, %v188_v9 }
  0x13   :  { %127 = vmatpush.bf16.msra.mxu0 %v174_v7  ;;  %189 = vrcp.f32 %v45_v10  ;;  %vm52_vm0 = vweird.f32 %v45_v10  ;;  %v58_v15 = vand.u32 2147483648, %v45_v10  ;;  %v56_v18 = vand.u32 2147483647, %v45_v10 }
  0x14   :  { %191 = vrcp.f32 %v46_v11  ;;  %v73_v19 = vand.u32 2147483648, %v46_v11  ;;  %vm67_vm2 = vweird.f32 %v46_v11  ;;  %v71_v21 = vand.u32 2147483647, %v46_v11 }
  0x15   :  { %v59_v23 = vor.u32 1.1754944e-38, %v58_v15  ;;  %vm57_vm5 = vcmp.eq.f32.partialorder %v56_v18, 8.507059e+37 }
  0x16   :  { %v74_v26 = vor.u32 1.1754944e-38, %v73_v19  ;;  %vm72_vm7 = vcmp.eq.f32.partialorder %v71_v21, 8.507059e+37 }
  0x19   :  { %v190_v12 = vpop.eup %189 }
  0x1a   :  { %v192_v13 = vpop.eup %191  ;;  %v48_v14 = vmul.f32 %v190_v12, %v45_v10  ;;  %vm53_vm1 = vweird.f32 %v190_v12 }
  0x1b   :  { %v63_v16 = vmul.f32 %v192_v13, %v46_v11  ;;  %vm68_vm3 = vweird.f32 %v192_v13  ;;  %vm54_vm4 = vmor %vm52_vm0, %vm53_vm1 }
  0x1c   :  { %v49_v17 = vsub.f32 1.0, %v48_v14  ;;  %vm69_vm6 = vmor %vm67_vm2, %vm68_vm3 }
  0x1d   :  { %v64_v20 = vsub.f32 1.0, %v63_v16 }
  0x1e   :  { %v50_v22 = vmul.f32 %v190_v12, %v49_v17 }
  0x1f   :  { %v65_v24 = vmul.f32 %v192_v13, %v64_v20 }
  0x20   :  { %v51_v25 = vadd.f32 %v190_v12, %v50_v22 }
  0x21   :  { %v66_v28 = vadd.f32 %v192_v13, %v65_v24 }
  0x22   :  { %v55_v30 = vsel %vm54_vm4, %v190_v12, %v51_v25 }
  0x23   :  { %v60_v31 = vsel %vm57_vm5, %v59_v23, %v55_v30  ;;  %v70_v32 = vsel %vm69_vm6, %v192_v13, %v66_v28 }
  0x24   :  { %v75_v33 = vsel %vm72_vm7, %v74_v26, %v70_v32  ;;  %v77_v34 = vmul.f32 %v60_v31, %v35_v27 }
  0x25   :  { %v78_v35 = vmul.f32 %v75_v33, %v36_v29 }
  0x27   :  { %v79_v36 = vpack.c.bf16 %v78_v35, %v77_v34 }
  0x29   :  { %173 = vmatmul.msk.bf16.vlgmr.msra.gmra.mxu0 %vm116_vm8, %v79_v36 }
  0xa6   :  { %v129_v38 = vpop.f32.mrf.mxu0 }
  0xa7   :  { %v130_v39 = vadd.f32 %v184_v37, %v129_v38 }
  0xa9   :  { %134 = vst.msk [vmem:[#allocation5] sm:$0xff] %vm116_vm8, %v130_v39 }
  0xae   :  { %v131_v40 = vpop.f32.mrf.mxu0 }
  0xaf   :  { %v132_v41 = vadd.f32 %v184_v37, %v131_v40 }
  0xb1   :  { %135 = vst.msk [vmem:[#allocation5 + $0x8] sm:$0xff] %vm116_vm8, %v132_v41 }
  0xb2   :  { %148 = dma.vmem_to_hbm [thread:$0]  %s141_s5, 256, %s143_s7, [#allocation4], %s249_s8, %s249_s8, %s250_s9  }
  0xb3   :  { %243 = dma.done.wait [#allocation4], 256  }
  0xb4   :  { %244 = vsyncadd [#allocation4], 4294967040 }
  0xb5   :  { %153 = vsyncpa [#allocation3], 1 }
  0xb6   :  { %154 = vsyncpa [#allocation4], 1 }

// kernel: chai_one_forward.3
= control target key start
LH: loop header
LB: loop body
LE: loop exit
PB: predicated region body
PF: predicated region fallthrough
CT: control target
= control target key end

     0   :  { %14 = vsyncpa [#allocation3], 0  ;;  %s473_s0 = inlined_call_operand.hbm [shape: f32[16,64], index: 0, kind: input, shape index: {}]   ;;  %s474_s1 = inlined_call_operand.vmem [shape: f32[1,64], index: 1, kind: input, shape index: {}]   ;;  %s475_s2 = inlined_call_operand.vmem [shape: f32[1,64], index: 2, kind: input, shape index: {}]   ;;  %s476_s3 = inlined_call_operand.hbm [shape: bf16[64,256], index: 3, kind: input, shape index: {}]   ;;  %s477_s4 = inlined_call_operand.vmem [shape: f32[1,256], index: 4, kind: input, shape index: {}]   ;;  %s478_s5 = inlined_call_operand.vmem [shape: f32[16,64], index: 5, kind: output, shape index: {0}]   ;;  %s479_s6 = inlined_call_operand.vmem [shape: f32[16,64], index: 6, kind: output, shape index: {1}]   ;;  %s480_s7 = inlined_call_operand.vmem [shape: f32[16,64], index: 7, kind: output, shape index: {2}]   ;;  %s481_s8 = inlined_call_operand.vmem [shape: f32[16,64], index: 8, kind: output, shape index: {3}]  }
   0x1   :  { %s20_s29 = sshll.u32 %s473_s0, 4  ;;  %s21_s29 = int_to_ptr.hbm [resolvable:$true] %s20_s29 }
   0x2   :  { %15 = vsyncpa [#allocation5], 0  ;;  %s359_s30 = smov [#allocation2]   ;;  %s37_s12 = sshll.u32 %s476_s3, 4  ;;  %s38_s12 = int_to_ptr.hbm [resolvable:$true] %s37_s12 }
   0x3   :  { %s22_s9 = sshll.u32 %s359_s30, 4  ;;  %s360_s13 = smov 128   ;;  %s23_s9 = int_to_ptr.vmem [resolvable:$true] %s22_s9 }
   0x4   :  { %s361_s14 = smov 8   ;;  %s362_s15 = smov [#allocation4]  }
   0x5   :  { %28 = dma.hbm_to_vmem [thread:$0]  %s21_s29, 256, %s23_s9, [#allocation3], %s360_s13, %s360_s13, %s361_s14  }
   0x6   :  { %s39_s16 = sshll.u32 %s362_s15, 4  ;;  %s40_s16 = int_to_ptr.vmem [resolvable:$true] %s39_s16 }
   0x7   :  { %45 = dma.hbm_to_vmem [thread:$0]  %s38_s12, 1024, %s40_s16, [#allocation5], %s360_s13, %s360_s13, %s361_s14  }
   0x8   :  { %355 = dma.done.wait [#allocation3], 256  }
   0x9   :  { %356 = vsyncadd [#allocation3], 4294967040 }
   0xa   :  { %357 = dma.done.wait [#allocation5], 1024  }
   0xb   :  { %358 = vsyncadd [#allocation5], 4294966272  ;;  %vm61_vm0 = vcmask 523264   ;;  %v57_v0 = vld [vmem:[#allocation2] sm:$0xff]  ;;  %v58_v2 = vld [vmem:[#allocation2 + $0x8] sm:$0xff]  ;;  %v363_v4 = vmov 64.0  }
   0xc   :  { %v62_v1 = vsel %vm61_vm0, %v57_v0, 0.0  ;;  %v65_v3 = vsel %vm61_vm0, %v58_v2, 0.0  ;;  %301 = vrcp.f32 %v363_v4  ;;  %v277_v21 = vld [vmem:[#allocation4 + $0x30] sm:$0xf]  ;;  %v292_v22 = vld [vmem:[#allocation4 + $0x34] sm:$0xf0] }
   0xd   :  { %63 = vadd.xlane.f32.xlu0 %v62_v1  ;;  %v291_v23 = vld [vmem:[#allocation4 + $0x34] sm:$0xf]  ;;  %v278_v24 = vor.u32 %v292_v22, %v277_v21  ;;  %v279_v25 = vld [vmem:[#allocation4 + $0x38] sm:$0xf0]  ;;  %v269_v27 = vld [vmem:[#allocation4 + $0x20] sm:$0xf] }
   0xe   :  { %v282_v26 = vor.u32 %v291_v23, %v279_v25  ;;  %v290_v28 = vld [vmem:[#allocation4 + $0x24] sm:$0xf0]  ;;  %v289_v29 = vld [vmem:[#allocation4 + $0x24] sm:$0xf]  ;;  %v271_v31 = vld [vmem:[#allocation4 + $0x28] sm:$0xf0] }
   0xf   :  { %185 = vmatpush.bf16.msra.mxu0 %v278_v24  ;;  %v270_v30 = vor.u32 %v290_v28, %v269_v27  ;;  %v274_v32 = vor.u32 %v289_v29, %v271_v31  ;;  %v261_v33 = vld [vmem:[#allocation4 + $0x10] sm:$0xf]  ;;  %v288_v34 = vld [vmem:[#allocation4 + $0x14] sm:$0xf0]  ;;  %v287_v35 = vld [vmem:[#allocation4 + $0x14] sm:$0xf] }
  0x10   :  { %199 = vmatpush.bf16.msra.mxu1 %v282_v26  ;;  %v262_v36 = vor.u32 %v288_v34, %v261_v33  ;;  %v263_v37 = vld [vmem:[#allocation4 + $0x18] sm:$0xf0]  ;;  %v253_v39 = vld [vmem:[#allocation4] sm:$0xf]  ;;  %v286_v40 = vld [vmem:[#allocation4 + $0x4] sm:$0xf0] }
  0x11   :  { %v266_v38 = vor.u32 %v287_v35, %v263_v37  ;;  %v285_v41 = vld [vmem:[#allocation4 + $0x4] sm:$0xf]  ;;  %v254_v43 = vor.u32 %v286_v40, %v253_v39  ;;  %v255_v44 = vld [vmem:[#allocation4 + $0x8] sm:$0xf0]  ;;  %s364_s21 = smov 64  }
  0x12   :  { %v302_v5 = vpop.eup %301  ;;  %v258_v46 = vor.u32 %v285_v41, %v255_v44 }
  0x13   :  { %v69_v6 = vmul.f32 64.0, %v302_v5  ;;  %vm73_vm1 = vweird.f32 %v302_v5  ;;  %186 = vmatpush.bf16.msra.mxu0 %v270_v30 }
  0x14   :  { %200 = vmatpush.bf16.msra.mxu1 %v274_v32 }
  0x15   :  { %66 = vadd.xlane.f32.xlu0 %v65_v3  ;;  %v70_v7 = vsub.f32 1.0, %v69_v6 }
  0x17   :  { %v71_v8 = vmul.f32 %v302_v5, %v70_v7  ;;  %187 = vmatpush.bf16.msra.mxu0 %v262_v36 }
  0x18   :  { %201 = vmatpush.bf16.msra.mxu1 %v266_v38 }
  0x19   :  { %v72_v9 = vadd.f32 %v302_v5, %v71_v8 }
  0x1b   :  { %v74_v10 = vsel %vm73_vm1, %v302_v5, %v72_v9  ;;  %188 = vmatpush.bf16.msra.mxu0 %v254_v43  ;;  %v300_v5 = vld [vmem:[%s475_s2] ss:$0 sm:$0xff] }
  0x1c   :  { %202 = vmatpush.bf16.msra.mxu1 %v258_v46 }
  0x80   :  { %v64_v11 = vpop.xlane.xlu0 %63 }
  0x81   :  { %v75_v12 = vmul.f32 %v74_v10, %v64_v11 }
  0x83   :  { %v418_v13 = vsub.f32 %v57_v0, %v75_v12  ;;  %v299_v0 = vld [vmem:[%s474_s1] ss:$0 sm:$0xff] }
  0x85   :  { %v79_v14 = vmul.f32 %v418_v13, %v418_v13 }
  0x87   :  { %v81_v15 = vsel %vm61_vm0, %v79_v14, 0.0 }
  0x88   :  { %82 = vadd.xlane.f32.xlu1 %v81_v15  ;;  %v67_v16 = vpop.xlane.xlu0 %66 }
  0x89   :  { %v76_v17 = vmul.f32 %v74_v10, %v67_v16 }
  0x8b   :  { %v423_v18 = vsub.f32 %v58_v2, %v76_v17 }
  0x8d   :  { %v80_v19 = vmul.f32 %v423_v18, %v423_v18 }
  0x8f   :  { %v84_v20 = vsel %vm61_vm0, %v80_v19, 0.0 }
  0x90   :  { %85 = vadd.xlane.f32.xlu1 %v84_v20 }
  0xfb   :  { %v83_v42 = vpop.xlane.xlu1 %82 }
  0xfc   :  { %v87_v45 = vmul.f32 %v83_v42, %v74_v10 }
  0xfe   :  { %v89_v47 = vadd.f32 1e-05, %v87_v45 }
 0x100   :  { %303 = vrsqrt.f32 %v89_v47  ;;  %vm97_vm3 = vweird.f32 %v89_v47 }
 0x103   :  { %v86_v48 = vpop.xlane.xlu1 %85 }
 0x104   :  { %v88_v49 = vmul.f32 %v86_v48, %v74_v10  ;;  %v132_v10 = vld [vmem:[%s477_s4] sm:$0x3] }
 0x105   :  { %v134_v11 = vperm.slane %v132_v10, 0  ;;  %v135_v12 = vperm.slane %v132_v10, 1 }
 0x106   :  { %v304_v50 = vpop.eup %303  ;;  %v90_v51 = vadd.f32 1e-05, %v88_v49 }
 0x107   :  { %v92_v52 = vmul.f32 %v304_v50, %v89_v47  ;;  %vm98_vm2 = vweird.f32 %v304_v50 }
 0x108   :  { %305 = vrsqrt.f32 %v90_v51  ;;  %vm99_vm4 = vmor %vm97_vm3, %vm98_vm2  ;;  %vm107_vm6 = vweird.f32 %v90_v51 }
 0x109   :  { %v93_v53 = vmul.f32 %v304_v50, %v92_v52 }
 0x10b   :  { %v94_v54 = vmul.f32 0.5, %v93_v53 }
 0x10d   :  { %v95_v55 = vsub.f32 1.5, %v94_v54 }
 0x10e   :  { %v306_v56 = vpop.eup %305 }
 0x10f   :  { %v96_v57 = vmul.f32 %v304_v50, %v95_v55  ;;  %v102_v58 = vmul.f32 %v306_v56, %v90_v51  ;;  %vm108_vm5 = vweird.f32 %v306_v56 }
 0x110   :  { %vm109_vm7 = vmor %vm107_vm6, %vm108_vm5 }
 0x111   :  { %v103_v59 = vmul.f32 %v306_v56, %v102_v58  ;;  %v100_v60 = vsel %vm99_vm4, %v304_v50, %v96_v57 }
 0x112   :  { %v111_v63 = vmul.f32 %v100_v60, %v418_v13 }
 0x113   :  { %v104_v61 = vmul.f32 0.5, %v103_v59 }
 0x114   :  { %v116_v4 = vmul.f32 %v299_v0, %v111_v63 }
 0x115   :  { %v105_v62 = vsub.f32 1.5, %v104_v61 }
 0x116   :  { %v121_v7 = vadd.f32 %v300_v5, %v116_v4 }
 0x117   :  { %v106_v1 = vmul.f32 %v306_v56, %v105_v62 }
 0x119   :  { %v110_v2 = vsel %vm109_vm7, %v306_v56, %v106_v1 }
 0x11a   :  { %v112_v3 = vmul.f32 %v110_v2, %v423_v18 }
 0x11c   :  { %v117_v6 = vmul.f32 %v299_v0, %v112_v3 }
 0x11e   :  { %v122_v8 = vadd.f32 %v300_v5, %v117_v6 }
 0x120   :  { %v123_v9 = vpack.c.bf16 %v122_v8, %v121_v7 }
 0x122   :  { %283 = vmatmul.msk.bf16.vlgmr.msra.gmra.mxu0 %vm61_vm0, %v123_v9  ;;  %284 = vmatmul.msk.bf16.vlgmr.msra.gmra.mxu1 %vm61_vm0, %v123_v9 }
 0x19f   :  { %v190_v13 = vpop.f32.mrf.mxu0  ;;  %v204_v14 = vpop.f32.mrf.mxu1 }
 0x1a0   :  { %v191_v15 = vadd.f32 %v190_v13, %v134_v11  ;;  %v205_v16 = vadd.f32 %v204_v14, %v135_v12 }
 0x1a2   :  { %209 = vst.msk [vmem:[%s478_s5] sm:$0xff] %vm61_vm0, %v191_v15  ;;  %225 = vrot.lane.b32.xlu0 %v205_v16, %s364_s21  ;;  %213 = vrot.lane.b32.xlu2 %v191_v15, %s364_s21 }
 0x1a3   :  { %221 = vst.msk [vmem:[%s480_s7] sm:$0xff] %vm61_vm0, %v205_v16 }
 0x1a7   :  { %v192_v17 = vpop.f32.mrf.mxu0  ;;  %v206_v18 = vpop.f32.mrf.mxu1 }
 0x1a8   :  { %v193_v19 = vadd.f32 %v192_v17, %v134_v11  ;;  %v207_v20 = vadd.f32 %v206_v18, %v135_v12 }
 0x1aa   :  { %210 = vst.msk [vmem:[%s478_s5 + $0x8] sm:$0xff] %vm61_vm0, %v193_v19  ;;  %227 = vrot.lane.b32.xlu1 %v207_v20, %s364_s21  ;;  %215 = vrot.lane.b32.xlu2 %v193_v19, %s364_s21 }
 0x1ab   :  { %222 = vst.msk [vmem:[%s480_s7 + $0x8] sm:$0xff] %vm61_vm0, %v207_v20 }
 0x1fc   :  { %v214_v21 = vpop.permute.xlu2 %213 }
 0x1fd   :  { %219 = vst.msk [vmem:[%s479_s6] sm:$0xff] %vm61_vm0, %v214_v21 }
 0x204   :  { %v216_v22 = vpop.permute.xlu2 %215 }
 0x205   :  { %220 = vst.msk [vmem:[%s479_s6 + $0x8] sm:$0xff] %vm61_vm0, %v216_v22 }
 0x214   :  { %v226_v23 = vpop.permute.xlu0 %225 }
 0x215   :  { %231 = vst.msk [vmem:[%s481_s8] sm:$0xff] %vm61_vm0, %v226_v23 }
 0x21c   :  { %v228_v24 = vpop.permute.xlu1 %227 }
 0x21d   :  { %232 = vst.msk [vmem:[%s481_s8 + $0x8] sm:$0xff] %vm61_vm0, %v228_v24 }
 0x21e   :  { %249 = vsyncpa [#allocation3], 1 }
 0x21f   :  { %250 = vsyncpa [#allocation5], 1 }

// kernel: chai_one_forward.4
= control target key start
LH: loop header
LB: loop body
LE: loop exit
PB: predicated region body
PF: predicated region fallthrough
CT: control target
= control target key end

     0   :  { %9 = vsyncpa [#allocation3], 0  ;;  %s1098_s15 = smov 0   ;;  %s1100_s16 = smov 0   ;;  %s1229_s0 = inlined_call_operand.vmem [shape: f32[2,8,64], index: 0, kind: input, shape index: {}]   ;;  %s1230_s1 = inlined_call_operand.vmem [shape: f32[2,8,64], index: 1, kind: input, shape index: {}]   ;;  %s1231_s2 = inlined_call_operand.vmem [shape: f32[2,8,64], index: 2, kind: input, shape index: {}]   ;;  %s1232_s3 = inlined_call_operand.hbm [shape: bf16[2,4,8,16], index: 3, kind: input, shape index: {}]   ;;  %s1233_s4 = inlined_call_operand.vmem [shape: f32[2,8,64], index: 4, kind: output, shape index: {}]  }
   0x1   :  { %s1102_s17 = smov 0  }
   0x2 LB: > { %s910_s18 = sadd.s32 4294967295, %s1062_s17   ;;  %s34_s19 = sadd.s32 1, %s1058_s16  ;;  %s1062_s17 = sphi %s1102_s17, %s15_s17   ;;  %s1058_s16 = sphi %s1100_s16, %s1235_s16   ;;  %s1054_s15 = sphi %s1098_s15, %s1234_s15  }
   0x3   : > { %p36_p0 = scmp.ge.s32.totalorder %s34_s19, 2  ;;  %p912_p1 = scmp.ge.s32.totalorder %s1062_s17, 1 }
   0x4   : > { %p176_p2 = scmp.lt.s32.totalorder %s1062_s17, 3  ;;  %p947_p4 = scmp.eq.s32.totalorder %s910_s18, 0 }
   0x5   : > { %s1237_s19 = smov (%p36_p0, %s34_s19), 0  ;;  %s187_s22 = sshll.u32 %s1232_s3, 4  ;;  %s188_s22 = int_to_ptr.hbm [resolvable:$true] %s187_s22 }
   0x6   : > { %p177_p3 = pnand %p912_p1, %p176_p2  ;;  %s1064_s23 = smov [#allocation2]  }
   0x7   : > { %s189_s24 = sshll.u32 %s1064_s23, 4  ;;  %s1065_s25 = smov 64   ;;  %s190_s24 = int_to_ptr.vmem [resolvable:$true] %s189_s24 }
   0x8   : > { %p943_p5 = pneg %p177_p3  ;;  %s1066_s26 = smov 4  }
   0x9   : > { %235 = sbr.rel (%p177_p3) target bundleno = 881 (0x371), region = 36 }
   0xa   : > { %p944_p6 = pnand %p947_p4, %p943_p5 }
   0xc   : > { %946 = dma.hbm_to_vmem [thread:$0]  (!%p944_p6), %s188_s22, 512, %s190_s24, [#allocation3], %s1065_s25, %s1065_s25, %s1066_s26  }
   0xe   : > { %1049 = dma.done.wait (%p947_p4), [#allocation3], 512  }
   0xf   : > { %1051 = vsyncadd (%p947_p4), [#allocation3], 4294966784  ;;  %p279_p7 = scmp.lt.s32.totalorder %s1054_s15, 1  ;;  %vm315_vm0 = vcmask 130048   ;;  %v336_v1 = vld [vmem:[#allocation2] sm:$0xf] }
  0x10   : > { %v340_v3 = vsel %vm315_vm0, %v336_v1, 0  ;;  %s1067_s8 = smov 112   ;;  %s1068_s9 = smov 80   ;;  %vm356_vm1 = vcmask 64512   ;;  %v338_v15 = vld [vmem:[#allocation2 + $0x10] sm:$0xf] }
  0x11   : > { %s1239_s15 = smov (!%p279_p7, %s1054_s15), 1  ;;  %349 = vmatpush.bf16.xpose.msra.mxu1 %v340_v3  ;;  %s1069_s10 = smov 96   ;;  %vm382_vm2 = vcmask 1043456   ;;  %v454_v21 = vld [vmem:[#allocation2 + $0x4] sm:$0xf]  ;;  %vm543_vm3 = vcmask 261248  }
  0x12   : > { %s1120_s27 = sshll.u32 %s1239_s15, 3  ;;  %v384_v17 = vsel %vm382_vm2, %v338_v15, 0  ;;  %v458_v23 = vsel %vm315_vm0, %v454_v21, 0  ;;  %v578_v31 = vld [vmem:[#allocation2 + $0x8] sm:$0xf]  ;;  %s1070_s14 = smov 16  }
  0x13   : > { %s291_s30 = scalar_lea.vmem %s1230_s1, %s1120_s27  ;;  %s285_s7 = scalar_lea.vmem %s1229_s0, %s1120_s27  ;;  %393 = vmatpush.bf16.msra.mxu2 %v384_v17  ;;  %v582_v36 = vsel %vm315_vm0, %v578_v31, 0  ;;  %v702_v39 = vld [vmem:[#allocation2 + $0xc] sm:$0xf]  ;;  %v580_v15 = vld [vmem:[#allocation2 + $0x18] sm:$0xf]  ;;  %vm667_vm4 = vcmask 392448  }
  0x14   : > { %v311_v0 = vld [vmem:[%s291_s30] sm:$0xff]  ;;  %s297_s13 = scalar_lea.vmem %s1231_s2, %s1120_s27  ;;  %v706_v42 = vsel %vm315_vm0, %v702_v39, 0  ;;  %s1071_s15 = smov 32   ;;  %vm791_vm5 = vcmask 523648  }
  0x15   : > { %v312_v2 = vpack.c.bf16 %v311_v0, %v311_v0  ;;  %v309_v4 = vld [vmem:[%s285_s7] sm:$0xff]  ;;  %s306_s21 = scalar_lea.vmem %s1233_s4, %s1120_s27  ;;  %s1072_s22 = smov 48  }
  0x16   : > { %v310_v6 = vpack.c.bf16 %v309_v4, %v309_v4  ;;  %v313_v16 = vld [vmem:[%s297_s13] sm:$0xff] }
  0x17   : > { %v320_v5 = vsel %vm315_vm0, %v312_v2, 0  ;;  %431 = vrot.lane.b32.xlu1 %v312_v2, %s1067_s8  ;;  %555 = vrot.lane.b32.xlu2 %v312_v2, %s1069_s10  ;;  %v1145_v18 = vpack.c.bf16 %v313_v16, %v313_v16  ;;  %v624_v16 = vsel %vm382_vm2, %v580_v15, 0 }
  0x18   : > { %329 = vmatpush.bf16.xpose.msra.mxu0 %v320_v5  ;;  %922 = vmatmul.msk.bf16.vlgmr.msra.gmra.mxu1 %vm315_vm0, %v310_v6 }
  0x19   : > { %v403_v19 = vsel %vm382_vm2, %v1145_v18, 0 }
  0x1a   : > { %412 = vmatpush.bf16.msra.mxu3 %v403_v19 }
  0x1e   : > { %467 = vmatpush.bf16.xpose.msrb.mxu3 %v458_v23 }
  0x1f   : > { %921 = vmatmul.msk.bf16.vlgmr.msra.gmra.mxu0 %vm315_vm0, %v310_v6  ;;  %428 = vrot.lane.b32.xlu1 %v310_v6, %s1067_s8 }
  0x20   : > { %552 = vrot.lane.b32.xlu2 %v310_v6, %s1069_s10 }
  0x27   : > { %676 = vrot.lane.b32.xlu1 %v310_v6, %s1068_s9 }
  0x71   : > { %v556_v32 = vpop.permute.xlu2 %555 }
  0x72   : > { %v561_v38 = vsel %vm315_vm0, %v556_v32, 0 }
  0x7a   : > { %v553_v44 = vpop.permute.xlu2 %552 }
  0x89   : > { %v432_v20 = vpop.permute.xlu1 %431 }
  0x8a   : > { %v437_v22 = vsel %vm315_vm0, %v432_v20, 0 }
  0x8b   : > { %446 = vmatpush.bf16.xpose.msrb.mxu2 %v437_v22 }
  0x91   : > { %v429_v41 = vpop.permute.xlu1 %428 }
  0x95   : > { %v351_v7 = vpop.f32.mrf.mxu1 }
  0x96   : > { %v355_v11 = vmul.f32 0.25, %v351_v7 }
  0x98   : > { %v360_v14 = vsel %vm356_vm1, %v355_v11, -inf }
  0x99   : > { %v677_v45 = vpop.permute.xlu1 %676 }
  0x9c   : > { %v331_v8 = vpop.f32.mrf.mxu0 }
  0x9d   : > { %v335_v9 = vmul.f32 0.25, %v331_v8  ;;  %v353_v12 = vpop.f32.mrf.mxu1 }
  0x9f   : > { %v357_v10 = vsel %vm356_vm1, %v335_v9, -inf }
  0xa0   : > { %358 = vmax.xlane.f32.xlu0 %v357_v10 }
  0xa4   : > { %v333_v13 = vpop.f32.mrf.mxu0 }
  0xa5   : > { %v456_v13 = vld [vmem:[#allocation2 + $0x14] sm:$0xf] }
  0xa8   : > { %361 = vmax.xlane.f32.xlu0 %v360_v14  ;;  %v500_v14 = vsel %vm382_vm2, %v456_v13, 0 }
  0xa9   : > { %509 = vmatpush.bf16.msrb.mxu0 %v500_v14 }
  0xad   : > { %633 = vmatpush.bf16.msra.mxu0 %v624_v16 }
  0xbc   : > { %679 = vrot.lane.b32.xlu0 %v312_v2, %s1068_s9 }
  0xc4   : > { %516 = vrot.lane.b32.xlu0 %v1145_v18, %s1067_s8 }
 0x113   : > { %v359_v24 = vpop.xlane.xlu0 %358 }
 0x11b   : > { %v362_v25 = vpop.xlane.xlu0 %361 }
 0x11c   : > { %v363_v26 = vmax.f32 %v359_v24, %v362_v25 }
 0x11e   : > { %v364_v27 = vsub.f32 %v335_v9, %v363_v26  ;;  %v367_v28 = vsub.f32 %v355_v11, %v363_v26 }
 0x120   : > { %v365_v29 = vmul.f32 1.442695, %v364_v27  ;;  %v368_v30 = vmul.f32 1.442695, %v367_v28 }
 0x122   : > { %982 = vpow2.f32 %v365_v29 }
 0x123   : > { %984 = vpow2.f32 %v368_v30 }
 0x128   : > { %v1152_v33 = vpop.eup %982 }
 0x129   : > { %v1154_v34 = vpop.eup %984  ;;  %v377_v35 = vpack.c.bf16 %v1152_v33, %v1152_v33 }
 0x12a   : > { %v378_v37 = vpack.c.bf16 %v1154_v34, %v1154_v34 }
 0x12b   : > { %924 = vmatmul.msk.bf16.vlgmr.msra.gmra.mxu3 %vm356_vm1, %v377_v35 }
 0x12c   : > { %923 = vmatmul.msk.bf16.vlgmr.msra.gmra.mxu2 %vm356_vm1, %v378_v37  ;;  %591 = vmatpush.bf16.xpose.msra.mxu3 %v582_v36  ;;  %v704_v37 = vld [vmem:[#allocation2 + $0x1c] sm:$0xf] }
 0x12d   : > { %570 = vmatpush.bf16.xpose.msra.mxu2 %v561_v38 }
 0x12e   : > { %v680_v40 = vpop.permute.xlu0 %679 }
 0x12f   : > { %v685_v43 = vsel %vm315_vm0, %v680_v40, 0  ;;  %v748_v40 = vsel %vm382_vm2, %v704_v37, 0 }
 0x136   : > { %v517_v11 = vpop.permute.xlu0 %516 }
 0x137   : > { %v522_v12 = vsel %vm382_vm2, %v517_v11, 0 }
 0x138   : > { %531 = vmatpush.bf16.msrb.mxu1 %v522_v12 }
 0x13b   : > { %926 = vmatmul.msk.bf16.vlgmr.msrb.gmra.mxu3 %vm315_vm0, %v429_v41 }
 0x13c   : > { %925 = vmatmul.msk.bf16.vlgmr.msrb.gmra.mxu2 %vm315_vm0, %v429_v41  ;;  %715 = vmatpush.bf16.xpose.msrb.mxu3 %v706_v42 }
 0x13d   : > { %694 = vmatpush.bf16.xpose.msrb.mxu2 %v685_v43 }
 0x14b   : > { %930 = vmatmul.msk.bf16.vlgmr.msra.gmra.mxu3 %vm315_vm0, %v553_v44 }
 0x14c   : > { %929 = vmatmul.msk.bf16.vlgmr.msra.gmra.mxu2 %vm315_vm0, %v553_v44 }
 0x15b   : > { %934 = vmatmul.msk.bf16.vlgmr.msrb.gmra.mxu3 %vm315_vm0, %v677_v45 }
 0x15c   : > { %933 = vmatmul.msk.bf16.vlgmr.msrb.gmra.mxu2 %vm315_vm0, %v677_v45 }
 0x1ae   : > { %v414_v46 = vpop.f32.mrf.mxu3 }
 0x1af   : > { %v395_v47 = vpop.f32.mrf.mxu2 }
 0x1b0   : > { %v1172_v48 = vadd.f32 %v414_v46, %v395_v47 }
 0x1b6   : > { %v416_v49 = vpop.f32.mrf.mxu3 }
 0x1b7   : > { %v397_v50 = vpop.f32.mrf.mxu2 }
 0x1be   : > { %v469_v51 = vpop.f32.mrf.mxu3 }
 0x1bf   : > { %v448_v52 = vpop.f32.mrf.mxu2  ;;  %v473_v53 = vmul.f32 0.25, %v469_v51 }
 0x1c0   : > { %v452_v54 = vmul.f32 0.25, %v448_v52 }
 0x1c1   : > { %v477_v55 = vsel %vm356_vm1, %v473_v53, -inf }
 0x1c2   : > { %v474_v56 = vsel %vm356_vm1, %v452_v54, -inf  ;;  %478 = vmax.xlane.f32.xlu1 %v477_v55 }
 0x1c3   : > { %475 = vmax.xlane.f32.xlu2 %v474_v56 }
 0x1c6   : > { %v471_v57 = vpop.f32.mrf.mxu3 }
 0x1c7   : > { %v450_v58 = vpop.f32.mrf.mxu2  ;;  %v370_v57 = vsel %vm356_vm1, %v1152_v33, 0.0 }
 0x1ce   : > { %v593_v59 = vpop.f32.mrf.mxu3 }
 0x1cf   : > { %v572_v60 = vpop.f32.mrf.mxu2  ;;  %v597_v61 = vmul.f32 0.25, %v593_v59 }
 0x1d0   : > { %v576_v62 = vmul.f32 0.25, %v572_v60 }
 0x1d1   : > { %v601_v63 = vsel %vm356_vm1, %v597_v61, -inf }
 0x1d2   : > { %v598_v0 = vsel %vm356_vm1, %v576_v62, -inf  ;;  %602 = vmax.xlane.f32.xlu2 %v601_v63  ;;  %v373_v63 = vsel %vm356_vm1, %v1154_v34, 0.0 }
 0x1d3   : > { %599 = vmax.xlane.f32.xlu0 %v598_v0 }
 0x1d6   : > { %v595_v1 = vpop.f32.mrf.mxu3 }
 0x1d7   : > { %v574_v2 = vpop.f32.mrf.mxu2 }
 0x1de   : > { %v717_v3 = vpop.f32.mrf.mxu3 }
 0x1df   : > { %v696_v4 = vpop.f32.mrf.mxu2  ;;  %v1182_v7 = vmul.f32 0.25, %v717_v3 }
 0x1e0   : > { %v1178_v5 = vmul.f32 0.25, %v696_v4 }
 0x1e1   : > { %v725_v10 = vsel %vm356_vm1, %v1182_v7, -inf }
 0x1e2   : > { %v722_v6 = vsel %vm356_vm1, %v1178_v5, -inf }
 0x1e3   : > { %723 = vmax.xlane.f32.xlu1 %v722_v6 }
 0x1e6   : > { %v719_v8 = vpop.f32.mrf.mxu3 }
 0x1e7   : > { %v698_v9 = vpop.f32.mrf.mxu2 }
 0x1ea   : > { %640 = vrot.lane.b32.xlu2 %v1145_v18, %s1069_s10 }
 0x1eb   : > { %726 = vmax.xlane.f32.xlu1 %v725_v10 }
 0x204   : > { %764 = vrot.lane.b32.xlu1 %v1145_v18, %s1068_s9 }
 0x235   : > { %v479_v17 = vpop.xlane.xlu1 %478 }
 0x236   : > { %v476_v19 = vpop.xlane.xlu2 %475 }
 0x237   : > { %v480_v20 = vmax.f32 %v476_v19, %v479_v17 }
 0x239   : > { %v481_v21 = vsub.f32 %v452_v54, %v480_v20  ;;  %v484_v22 = vsub.f32 %v473_v53, %v480_v20 }
 0x23b   : > { %v482_v23 = vmul.f32 1.442695, %v481_v21  ;;  %v485_v24 = vmul.f32 1.442695, %v484_v22 }
 0x23d   : > { %986 = vpow2.f32 %v482_v23 }
 0x23e   : > { %988 = vpow2.f32 %v485_v24 }
 0x243   : > { %v987_v18 = vpop.eup %986 }
 0x244   : > { %v989_v25 = vpop.eup %988  ;;  %v487_v26 = vsel %vm356_vm1, %v987_v18, 0.0  ;;  %v494_v27 = vpack.c.bf16 %v987_v18, %v987_v18 }
 0x245   : > { %488 = vadd.xlane.f32.xlu0 %v487_v26  ;;  %v490_v28 = vsel %vm356_vm1, %v989_v25, 0.0  ;;  %v495_v29 = vpack.c.bf16 %v989_v25, %v989_v25  ;;  %v603_v30 = vpop.xlane.xlu2 %602 }
 0x246   : > { %491 = vadd.xlane.f32.xlu2 %v490_v28  ;;  %928 = vmatmul.msk.bf16.vlgmr.msrb.gmra.mxu1 %vm356_vm1, %v494_v27  ;;  %v600_v31 = vpop.xlane.xlu0 %599 }
 0x247   : > { %927 = vmatmul.msk.bf16.vlgmr.msrb.gmra.mxu0 %vm356_vm1, %v495_v29  ;;  %v604_v32 = vmax.f32 %v600_v31, %v603_v30 }
 0x248   : > { %757 = vmatpush.bf16.msrb.mxu0 %v748_v40 }
 0x249   : > { %v605_v35 = vsub.f32 %v576_v62, %v604_v32  ;;  %v608_v36 = vsub.f32 %v597_v61, %v604_v32 }
 0x24b   : > { %v606_v38 = vmul.f32 1.442695, %v605_v35  ;;  %v609_v39 = vmul.f32 1.442695, %v608_v36 }
 0x24d   : > { %990 = vpow2.f32 %v606_v38  ;;  %v641_v41 = vpop.permute.xlu2 %640 }
 0x24e   : > { %992 = vpow2.f32 %v609_v39  ;;  %v646_v42 = vsel %vm382_vm2, %v641_v41, 0 }
 0x24f   : > { %655 = vmatpush.bf16.msra.mxu1 %v646_v42 }
 0x253   : > { %v991_v43 = vpop.eup %990 }
 0x254   : > { %v993_v44 = vpop.eup %992  ;;  %v618_v45 = vpack.c.bf16 %v991_v43, %v991_v43  ;;  %v611_v46 = vsel %vm356_vm1, %v991_v43, 0.0 }
 0x255   : > { %v619_v47 = vpack.c.bf16 %v993_v44, %v993_v44  ;;  %612 = vadd.xlane.f32.xlu0 %v611_v46  ;;  %v614_v50 = vsel %vm356_vm1, %v993_v44, 0.0 }
 0x256   : > { %v724_v49 = vpop.xlane.xlu1 %723  ;;  %932 = vmatmul.msk.bf16.vlgmr.msra.gmra.mxu1 %vm356_vm1, %v618_v45 }
 0x257   : > { %931 = vmatmul.msk.bf16.vlgmr.msra.gmra.mxu0 %vm356_vm1, %v619_v47 }
 0x25d   : > { %615 = vadd.xlane.f32.xlu0 %v614_v50 }
 0x25e   : > { %v727_v51 = vpop.xlane.xlu1 %726 }
 0x25f   : > { %v728_v52 = vmax.f32 %v724_v49, %v727_v51 }
 0x261   : > { %v729_v53 = vsub.f32 %v1178_v5, %v728_v52  ;;  %v732_v54 = vsub.f32 %v1182_v7, %v728_v52 }
 0x263   : > { %v730_v55 = vmul.f32 1.442695, %v729_v53  ;;  %v733_v56 = vmul.f32 1.442695, %v732_v54 }
 0x265   : > { %994 = vpow2.f32 %v730_v55  ;;  %371 = vadd.xlane.f32.xlu0 %v370_v57 }
 0x266   : > { %996 = vpow2.f32 %v733_v56 }
 0x26b   : > { %v995_v58 = vpop.eup %994 }
 0x26c   : > { %v997_v59 = vpop.eup %996  ;;  %v735_v60 = vsel %vm356_vm1, %v995_v58, 0.0  ;;  %v742_v1 = vpack.c.bf16 %v995_v58, %v995_v58 }
 0x26d   : > { %v743_v61 = vpack.c.bf16 %v997_v59, %v997_v59  ;;  %736 = vadd.xlane.f32.xlu1 %v735_v60  ;;  %v738_v62 = vsel %vm356_vm1, %v997_v59, 0.0 }
 0x26e   : > { %739 = vadd.xlane.f32.xlu0 %v738_v62 }
 0x26f   : > { %935 = vmatmul.msk.bf16.vlgmr.msrb.gmra.mxu0 %vm356_vm1, %v743_v61 }
 0x276   : > { %374 = vadd.xlane.f32.xlu0 %v373_v63  ;;  %v765_v0 = vpop.permute.xlu1 %764 }
 0x277   : > { %v770_v33 = vsel %vm382_vm2, %v765_v0, 0 }
 0x278   : > { %779 = vmatpush.bf16.msrb.mxu1 %v770_v33 }
 0x27b   : > { %936 = vmatmul.msk.bf16.vlgmr.msrb.gmra.mxu1 %vm356_vm1, %v742_v1 }
 0x2b8   : > { %v489_v3 = vpop.xlane.xlu0 %488 }
 0x2b9   : > { %v492_v2 = vpop.xlane.xlu2 %491 }
 0x2ba   : > { %v493_v4 = vadd.f32 %v492_v2, %v489_v3 }
 0x2bc   : > { %998 = vrcp.f32 %v493_v4 }
 0x2c2   : > { %v999_v8 = vpop.eup %998 }
 0x2c3   : > { %v533_v5 = vpop.f32.mrf.mxu1 }
 0x2c4   : > { %v511_v6 = vpop.f32.mrf.mxu0 }
 0x2c5   : > { %v534_v7 = vadd.f32 %v533_v5, %v511_v6 }
 0x2c7   : > { %v538_v9 = vmul.f32 %v999_v8, %v534_v7 }
 0x2c8   : > { %v613_v10 = vpop.xlane.xlu0 %612 }
 0x2c9   : > { %540 = vrot.lane.b32.xlu2 %v538_v9, %s1070_s14 }
 0x2cb   : > { %v535_v34 = vpop.f32.mrf.mxu1 }
 0x2cc   : > { %v513_v11 = vpop.f32.mrf.mxu0 }
 0x2d0   : > { %v616_v12 = vpop.xlane.xlu0 %615 }
 0x2d1   : > { %v617_v13 = vadd.f32 %v616_v12, %v613_v10 }
 0x2d3   : > { %1000 = vrcp.f32 %v617_v13  ;;  %v657_v14 = vpop.f32.mrf.mxu1 }
 0x2d4   : > { %v635_v15 = vpop.f32.mrf.mxu0 }
 0x2d5   : > { %v658_v16 = vadd.f32 %v657_v14, %v635_v15 }
 0x2d8   : > { %v372_v17 = vpop.xlane.xlu0 %371 }
 0x2d9   : > { %v1001_v19 = vpop.eup %1000 }
 0x2da   : > { %v662_v20 = vmul.f32 %v1001_v19, %v658_v16 }
 0x2db   : > { %v659_v21 = vpop.f32.mrf.mxu1 }
 0x2dc   : > { %v637_v22 = vpop.f32.mrf.mxu0  ;;  %664 = vrot.lane.b32.xlu0 %v662_v20, %s1071_s15 }
 0x2e0   : > { %v737_v26 = vpop.xlane.xlu1 %736 }
 0x2e1   : > { %v740_v23 = vpop.xlane.xlu0 %739 }
 0x2e2   : > { %v741_v27 = vadd.f32 %v740_v23, %v737_v26 }
 0x2e9   : > { %v375_v24 = vpop.xlane.xlu0 %374 }
 0x2ea   : > { %v376_v18 = vadd.f32 %v375_v24, %v372_v17 }
 0x2ec   : > { %1002 = vrcp.f32 %v376_v18  ;;  %v759_v25 = vpop.f32.mrf.mxu0 }
 0x2ed   : > { %1004 = vrcp.f32 %v741_v27 }
 0x2f2   : > { %v1003_v28 = vpop.eup %1002 }
 0x2f3   : > { %v419_v29 = vmul.f32 %v1003_v28, %v1172_v48  ;;  %v1005_v35 = vpop.eup %1004 }
 0x2f4   : > { %v761_v30 = vpop.f32.mrf.mxu0 }
 0x2f5   : > { %420 = vst.msk [vmem:[%s306_s21] sm:$0xff] %vm315_vm0, %v419_v29 }
 0x2f8   : > { %v781_v31 = vpop.f32.mrf.mxu1 }
 0x2f9   : > { %v782_v32 = vadd.f32 %v781_v31, %v759_v25 }
 0x2fb   : > { %v786_v36 = vmul.f32 %v1005_v35, %v782_v32 }
 0x2fd   : > { %788 = vrot.lane.b32.xlu1 %v786_v36, %s1072_s22 }
 0x300   : > { %v783_v37 = vpop.f32.mrf.mxu1 }
 0x323   : > { %v541_v38 = vpop.permute.xlu2 %540 }
 0x324   : > { %544 = vst.msk [vmem:[%s306_s21] sm:$0xff] %vm543_vm3, %v541_v38 }
 0x34e   : > { %v665_v39 = vpop.permute.xlu0 %664 }
 0x34f   : > { %668 = vst.msk [vmem:[%s306_s21] sm:$0xff] %vm667_vm4, %v665_v39 }
 0x36f   : > { %v789_v40 = vpop.permute.xlu1 %788 }
 0x370   : > { %792 = vst.msk [vmem:[%s306_s21] sm:$0xff] %vm791_vm5, %v789_v40 }
 0x371 PF: > { %s15_s17 = sadd.s32 1, %s1062_s17   ;;  %s1234_s15 = smov %s1058_s16 }
 0x372   : > { %p12_p8 = scmp.ge.s32.totalorder %s15_s17, 4   ;;  %s1235_s16 = smov %s1237_s19 }
 0x374   :  { %14 = sbr.rel (!%p12_p8) target bundleno = 2 (0x2), region = 84 }
 0x379   :  { %821 = vsyncpa [#allocation3], 1 }
 0x37a   :  { %823 = vsyncpa [#allocation3 + $0x1], 1 }

</bundles_post_ra>
